<compile_context>
chip_gen: v5e
topology: v5e:2x2
jax: 0.10.0
libtpu: 0.0.40
codegen_flags: <defaults>
</compile_context>

<pallas_src>
import jax
import jax.numpy as jnp
from jax.experimental import pallas as pl
from jax.experimental.pallas import tpu as pltpu

H1, H2 = 512, 256
LRELU_SLOPE = 0.2
_VMEM_BUDGET_BYTES = 40 * 1024 * 1024   # fits v7x's 64 MiB VMEM with headroom


def _round_up(x, m):
    return ((x + m - 1) // m) * m


def _choose_tile_m(batch, idim):
    """Pick an M tile: as close to 256 (MXU height on v6e/v7x) as batch/VMEM allow."""
    # Resident bf16 W1/W2 (assume double-buffered by the pipeline) + small f32 tensors.
    weight_bytes = 2 * 2 * (idim * H1 + H1 * H2) + 2 * 4 * (H1 + H2 + H2 + 1)
    # Per-row cost: double-buffered f32 x tile + f32 hidden temporaries + f32 output row.
    per_row_bytes = 2 * 4 * idim + 4 * (H1 + H2 + 1)
    cap = max(8, (_VMEM_BUDGET_BYTES - weight_bytes) // per_row_bytes)
    tile_m = int(min(256, cap, _round_up(batch, 8)))
    return max(8, (tile_m // 8) * 8)


def _discriminator_kernel(x_ref, w1_ref, b1_ref, w2_ref, b2_ref, w3_ref, b3_ref, out_ref):
    """One batch tile of the fused 3-layer MLP.

    x_ref (tile_m, idim) f32, w1_ref (idim, 512) bf16, w2_ref (512, 256) bf16,
    w3_ref (1, 256) f32 (layer-3 weight as a row vector), biases f32, out f32.
    """
    # Cast the f32 tile to bf16 on the VPU (cheap) -> bf16 MXU operands.
    x_bf = x_ref[...].astype(jnp.bfloat16)

    # Layer 1: MXU matmul (bf16 operands, f32 accumulation) + bias + LeakyReLU(0.2).
    h1 = jnp.dot(x_bf, w1_ref[...], preferred_element_type=jnp.float32) + b1_ref[...]
    h1 = jnp.maximum(h1, LRELU_SLOPE * h1)

    # Layer 2: MXU matmul (cast the f32 activations back to bf16 for the MXU).
    h2 = jnp.dot(h1.astype(jnp.bfloat16), w2_ref[...],
                 preferred_element_type=jnp.float32) + b2_ref[...]
    h2 = jnp.maximum(h2, LRELU_SLOPE * h2)

    # Layer 3: N=1 matmul would waste the MXU -> VPU multiply + XLU lane reduction in f32.
    h3 = jnp.sum(h2 * w3_ref[...], axis=-1, keepdims=True) + b3_ref[...]

    # Sigmoid: exp on the EUP; approx reciprocal also lowers to the EUP.
    out_ref[...] = (pl.reciprocal(1.0 + jnp.exp(-h3), approx=True)).astype(out_ref.dtype)


def discriminator_forward(x_img, params):
    """x_img: (B, C, H, W) float32 -> returns (B, 1) probabilities (float32)."""
    w1, b1, w2, b2, w3, b3 = params
    B = x_img.shape[0]
    idim = w1.shape[0]
    x = x_img.reshape(B, idim)  # same flattening as torch x.view(B, -1); metadata-only

    tile_m = _choose_tile_m(B, idim)
    b_pad = _round_up(B, tile_m)
    if b_pad != B:
        x = jnp.pad(x, ((0, b_pad - B), (0, 0)))

    # bf16 weights: 2x MXU throughput, half the HBM/VMEM footprint for W1 (dominant buffer).
    w1_bf = w1.astype(jnp.bfloat16)
    w2_bf = w2.astype(jnp.bfloat16)
    w3_row = w3.reshape(1, H2).astype(jnp.float32)   # layer 3 runs on the VPU in f32

    grid = (b_pad // tile_m,)

    flops = 2 * b_pad * (idim * H1 + H1 * H2 + H2)
    bytes_accessed = (x.size * 4 + w1_bf.size * 2 + w2_bf.size * 2
                      + (b1.size + b2.size + w3_row.size + b3.size) * 4
                      + b_pad * 4)

    out = pl.pallas_call(
        _discriminator_kernel,
        out_shape=jax.ShapeDtypeStruct((b_pad, 1), jnp.float32),
        grid_spec=pltpu.PrefetchScalarGridSpec(
            num_scalar_prefetch=0,
            grid=grid,
            in_specs=[
                pl.BlockSpec((tile_m, idim), lambda i: (i, 0)),   # x: tiled over batch (f32)
                pl.BlockSpec((idim, H1), lambda i: (0, 0)),       # W1: resident (DMA'd once)
                pl.BlockSpec((1, H1), lambda i: (0, 0)),          # b1
                pl.BlockSpec((H1, H2), lambda i: (0, 0)),         # W2: resident
                pl.BlockSpec((1, H2), lambda i: (0, 0)),          # b2
                pl.BlockSpec((1, H2), lambda i: (0, 0)),          # w3 as a row vector
                pl.BlockSpec((1, 1), lambda i: (0, 0)),           # b3
            ],
            out_specs=pl.BlockSpec((tile_m, 1), lambda i: (i, 0)),
        ),
        compiler_params=pltpu.CompilerParams(
            # "parallel" batch axis: shards tiles across the 2 TensorCores on v7x,
            # harmless on v5e/v6e.
            dimension_semantics=("parallel",),
            vmem_limit_bytes=64 * 1024 * 1024,
        ),
        cost_estimate=pl.CostEstimate(
            flops=int(flops), transcendentals=int(2 * b_pad),
            bytes_accessed=int(bytes_accessed)),
    )(x, w1_bf, b1, w2_bf, b2, w3_row, b3)

    return out[:B]


def init_params(key, idim):
    """Deterministic init mimicking nn.Linear's uniform(-1/sqrt(fan_in), 1/sqrt(fan_in))."""
    dims = [(idim, H1), (H1, H2), (H2, 1)]
    params = []
    for (fan_in, fan_out) in dims:
        key, k_w, k_b = jax.random.split(key, 3)
        bound = 1.0 / jnp.sqrt(jnp.float32(fan_in))
        w = jax.random.uniform(k_w, (fan_in, fan_out), jnp.float32, -bound, bound)
        b = jax.random.uniform(k_b, (1, fan_out), jnp.float32, -bound, bound)
        params.extend([w, b])
    return tuple(params)


def reference_forward_f32(x_img, params):
    """Plain-JAX f32 reference (exact PyTorch semantics)."""
    w1, b1, w2, b2, w3, b3 = params
    x = x_img.reshape(x_img.shape[0], -1)
    h = x @ w1 + b1
    h = jnp.maximum(h, LRELU_SLOPE * h)
    h = h @ w2 + b2
    h = jnp.maximum(h, LRELU_SLOPE * h)
    h = h @ w3 + b3
    return jax.nn.sigmoid(h)


def reference_forward_mixed(x_img, params):
    """Plain-JAX reference mirroring the kernel's mixed precision (bf16 MXU ops, f32 accum)."""
    w1, b1, w2, b2, w3, b3 = params
    x = x_img.reshape(x_img.shape[0], -1).astype(jnp.bfloat16)
    h = jnp.dot(x, w1.astype(jnp.bfloat16), preferred_element_type=jnp.float32) + b1
    h = jnp.maximum(h, LRELU_SLOPE * h)
    h = jnp.dot(h.astype(jnp.bfloat16), w2.astype(jnp.bfloat16),
                preferred_element_type=jnp.float32) + b2
    h = jnp.maximum(h, LRELU_SLOPE * h)
    h = jnp.sum(h * w3.reshape(1, -1), axis=-1, keepdims=True) + b3
    return jax.nn.sigmoid(h)


if __name__ == "__main__":
    # img_size = (4, 16, 16) -> idim = 1024, batch = 2
    B, C, Himg, Wimg = 2, 4, 16, 16
    idim = C * Himg * Wimg

    key = jax.random.PRNGKey(0)
    key, kx = jax.random.split(key)
    x_img = jax.random.normal(kx, (B, C, Himg, Wimg), jnp.float32)

    params = init_params(key, idim)

    out = jax.block_until_ready(discriminator_forward(x_img, params))
    assert out.shape == (B, 1)

    ref_mixed = reference_forward_mixed(x_img, params)   # same precision as the kernel
    ref_f32 = reference_forward_f32(x_img, params)       # exact PyTorch f32 semantics
    assert jnp.allclose(out, ref_mixed, atol=5e-3, rtol=0.0), "mismatch vs mixed-precision ref"
    assert jnp.allclose(out, ref_f32, atol=2e-2, rtol=0.0), "mismatch vs f32 reference"
    print("KERNEL_OK")
</pallas_src>

<mosaic_0001>
module attributes {stable_mosaic.version = 11 : i64} {
  func.func @_discriminator_kernel(%arg0: i32, %arg1: memref<8x1024xf32, #tpu.memory_space<vmem>>, %arg2: memref<1024x512xbf16, #tpu.memory_space<vmem>>, %arg3: memref<1x512xf32, #tpu.memory_space<vmem>>, %arg4: memref<512x256xbf16, #tpu.memory_space<vmem>>, %arg5: memref<1x256xf32, #tpu.memory_space<vmem>>, %arg6: memref<1x256xf32, #tpu.memory_space<vmem>>, %arg7: memref<1x1xf32, #tpu.memory_space<vmem>>, %arg8: memref<8x1xf32, #tpu.memory_space<vmem>>) attributes {dimension_semantics = [#tpu.dimension_semantics<parallel>], iteration_bounds = array<i64: 1>, scalar_prefetch = 0 : i64, scratch_operands = 0 : i64, tpu.core_type = #tpu.core_type<tc>, window_params = [{transform_indices = @transform_0, window_bounds = array<i64: 8, 1024>}, {pipeline_mode = #tpu.pipeline_mode<synchronous>, transform_indices = @transform_1, window_bounds = array<i64: 1024, 512>}, {pipeline_mode = #tpu.pipeline_mode<synchronous>, transform_indices = @transform_2, window_bounds = array<i64: 1, 512>}, {pipeline_mode = #tpu.pipeline_mode<synchronous>, transform_indices = @transform_3, window_bounds = array<i64: 512, 256>}, {pipeline_mode = #tpu.pipeline_mode<synchronous>, transform_indices = @transform_4, window_bounds = array<i64: 1, 256>}, {pipeline_mode = #tpu.pipeline_mode<synchronous>, transform_indices = @transform_5, window_bounds = array<i64: 1, 256>}, {pipeline_mode = #tpu.pipeline_mode<synchronous>, transform_indices = @transform_6, window_bounds = array<i64: 1, 1>}, {transform_indices = @transform_7, window_bounds = array<i64: 8, 1>}]} {
    %c0 = arith.constant 0 : index
    %c0_0 = arith.constant 0 : index
    %0 = vector.load %arg1[%c0, %c0_0] : memref<8x1024xf32, #tpu.memory_space<vmem>>, vector<8x1024xf32>
    %1 = arith.truncf %0 : vector<8x1024xf32> to vector<8x1024xbf16>
    %c0_1 = arith.constant 0 : index
    %c0_2 = arith.constant 0 : index
    %2 = vector.load %arg2[%c0_1, %c0_2] : memref<1024x512xbf16, #tpu.memory_space<vmem>>, vector<1024x512xbf16>
    %cst = arith.constant dense<0.000000e+00> : vector<8x512xf32>
    %3 = tpu.matmul %1, %2, %cst {dimension_numbers = #tpu.dot_dimension_numbers<[1], [0], [0], [1], [0, 0, 1, 1], [], []>} : vector<8x1024xbf16>, vector<1024x512xbf16>, vector<8x512xf32> -> vector<8x512xf32>
    %c0_3 = arith.constant 0 : index
    %c0_4 = arith.constant 0 : index
    %4 = vector.load %arg3[%c0_3, %c0_4] : memref<1x512xf32, #tpu.memory_space<vmem>>, vector<1x512xf32>
    %5 = vector.broadcast %4 : vector<1x512xf32> to vector<8x512xf32>
    %6 = arith.addf %3, %5 : vector<8x512xf32>
    %cst_5 = arith.constant 2.000000e-01 : f32
    %7 = vector.broadcast %cst_5 : f32 to vector<8x512xf32>
    %8 = arith.mulf %7, %6 : vector<8x512xf32>
    %9 = arith.maximumf %6, %8 : vector<8x512xf32>
    %10 = arith.truncf %9 : vector<8x512xf32> to vector<8x512xbf16>
    %c0_6 = arith.constant 0 : index
    %c0_7 = arith.constant 0 : index
    %11 = vector.load %arg4[%c0_6, %c0_7] : memref<512x256xbf16, #tpu.memory_space<vmem>>, vector<512x256xbf16>
    %cst_8 = arith.constant dense<0.000000e+00> : vector<8x256xf32>
    %12 = tpu.matmul %10, %11, %cst_8 {dimension_numbers = #tpu.dot_dimension_numbers<[1], [0], [0], [1], [0, 0, 1, 1], [], []>} : vector<8x512xbf16>, vector<512x256xbf16>, vector<8x256xf32> -> vector<8x256xf32>
    %c0_9 = arith.constant 0 : index
    %c0_10 = arith.constant 0 : index
    %13 = vector.load %arg5[%c0_9, %c0_10] : memref<1x256xf32, #tpu.memory_space<vmem>>, vector<1x256xf32>
    %14 = vector.broadcast %13 : vector<1x256xf32> to vector<8x256xf32>
    %15 = arith.addf %12, %14 : vector<8x256xf32>
    %cst_11 = arith.constant 2.000000e-01 : f32
    %16 = vector.broadcast %cst_11 : f32 to vector<8x256xf32>
    %17 = arith.mulf %16, %15 : vector<8x256xf32>
    %18 = arith.maximumf %15, %17 : vector<8x256xf32>
    %c0_12 = arith.constant 0 : index
    %c0_13 = arith.constant 0 : index
    %19 = vector.load %arg6[%c0_12, %c0_13] : memref<1x256xf32, #tpu.memory_space<vmem>>, vector<1x256xf32>
    %20 = vector.broadcast %19 : vector<1x256xf32> to vector<8x256xf32>
    %21 = arith.mulf %18, %20 : vector<8x256xf32>
    %cst_14 = arith.constant dense<0.000000e+00> : vector<8xf32>
    %22 = vector.multi_reduction <add>, %21, %cst_14 [1] : vector<8x256xf32> to vector<8xf32>
    %23 = vector.shape_cast %22 : vector<8xf32> to vector<8x1xf32>
    %c0_15 = arith.constant 0 : index
    %c0_16 = arith.constant 0 : index
    %24 = vector.load %arg7[%c0_15, %c0_16] : memref<1x1xf32, #tpu.memory_space<vmem>>, vector<1x1xf32>
    %25 = vector.broadcast %24 : vector<1x1xf32> to vector<8x1xf32>
    %26 = arith.addf %23, %25 : vector<8x1xf32>
    %cst_17 = arith.constant 0.000000e+00 : f32
    %27 = vector.broadcast %cst_17 : f32 to vector<8x1xf32>
    %28 = arith.subf %27, %26 : vector<8x1xf32>
    %29 = math.exp %28 : vector<8x1xf32>
    %cst_18 = arith.constant 1.000000e+00 : f32
    %30 = vector.broadcast %cst_18 : f32 to vector<8x1xf32>
    %31 = arith.addf %30, %29 : vector<8x1xf32>
    %32 = tpu.reciprocal %31 {approx = true} : vector<8x1xf32> -> vector<8x1xf32>
    %c0_19 = arith.constant 0 : index
    %c0_20 = arith.constant 0 : index
    %33 = vector.load %arg8[%c0_19, %c0_20] : memref<8x1xf32, #tpu.memory_space<vmem>>, vector<8x1xf32>
    tpu.vector_store %arg8[%c0_19, %c0_20], %32 {strides = array<i32>} : memref<8x1xf32, #tpu.memory_space<vmem>>, vector<8x1xf32>,
    return
  }
  func.func @transform_0(%arg0: i32) -> (i32, i32) {
    %c0_i32 = arith.constant 0 : i32
    %c0_i32_0 = arith.constant 0 : i32
    return %arg0, %c0_i32 : i32, i32
  }
  func.func @transform_1(%arg0: i32) -> (i32, i32) {
    %c0_i32 = arith.constant 0 : i32
    %c0_i32_0 = arith.constant 0 : i32
    %c0_i32_1 = arith.constant 0 : i32
    return %c0_i32, %c0_i32_0 : i32, i32
  }
  func.func @transform_2(%arg0: i32) -> (i32, i32) {
    %c0_i32 = arith.constant 0 : i32
    %c0_i32_0 = arith.constant 0 : i32
    %c0_i32_1 = arith.constant 0 : i32
    return %c0_i32, %c0_i32_0 : i32, i32
  }
  func.func @transform_3(%arg0: i32) -> (i32, i32) {
    %c0_i32 = arith.constant 0 : i32
    %c0_i32_0 = arith.constant 0 : i32
    %c0_i32_1 = arith.constant 0 : i32
    return %c0_i32, %c0_i32_0 : i32, i32
  }
  func.func @transform_4(%arg0: i32) -> (i32, i32) {
    %c0_i32 = arith.constant 0 : i32
    %c0_i32_0 = arith.constant 0 : i32
    %c0_i32_1 = arith.constant 0 : i32
    return %c0_i32, %c0_i32_0 : i32, i32
  }
  func.func @transform_5(%arg0: i32) -> (i32, i32) {
    %c0_i32 = arith.constant 0 : i32
    %c0_i32_0 = arith.constant 0 : i32
    %c0_i32_1 = arith.constant 0 : i32
    return %c0_i32, %c0_i32_0 : i32, i32
  }
  func.func @transform_6(%arg0: i32) -> (i32, i32) {
    %c0_i32 = arith.constant 0 : i32
    %c0_i32_0 = arith.constant 0 : i32
    %c0_i32_1 = arith.constant 0 : i32
    return %c0_i32, %c0_i32_0 : i32, i32
  }
  func.func @transform_7(%arg0: i32) -> (i32, i32) {
    %c0_i32 = arith.constant 0 : i32
    %c0_i32_0 = arith.constant 0 : i32
    return %arg0, %c0_i32 : i32, i32
  }
}

</mosaic_0001>

<bundles_post_ra>
// kernel: tpu_custom_call.1
= control target key start
LH: loop header
LB: loop body
LE: loop exit
PB: predicated region body
PF: predicated region fallthrough
CT: control target
= control target key end

     0   :  { %s4476_s0 = inlined_call_operand.hbm [shape: f32[8,1024], index: 0, kind: input, shape index: {}]   ;;  %s4477_s1 = inlined_call_operand.hbm [shape: bf16[1024,512], index: 1, kind: input, shape index: {}]   ;;  %s4478_s2 = inlined_call_operand.hbm [shape: f32[1,512], index: 2, kind: input, shape index: {}]   ;;  %s4479_s3 = inlined_call_operand.hbm [shape: bf16[512,256], index: 3, kind: input, shape index: {}]   ;;  %s4480_s4 = inlined_call_operand.vmem [shape: f32[1,256], index: 4, kind: input, shape index: {}]   ;;  %s4481_s5 = inlined_call_operand.vmem [shape: f32[1,256], index: 5, kind: input, shape index: {}]   ;;  %s4482_s6 = inlined_call_operand.<no memory space> [shape: f32[1,1], index: 6, kind: input, shape index: {}]   ;;  %s4483_s7 = inlined_call_operand.vmem [shape: f32[8,1], index: 7, kind: output, shape index: {}]  }
   0x1   :  { %v12_v0 = vstv %s4482_s6 }
   0x2   :  { %13 = vst [vmem:[#allocation2] sm:$0x1] %v12_v0 }
   0x3   :  { %14 = vsyncpa [#allocation4], 0 }
   0x4   :  { %15 = vsyncpa [#allocation6], 0  ;;  %s32_s28 = sshll.u32 %s4477_s1, 4  ;;  %s33_s28 = int_to_ptr.hbm [resolvable:$true] %s32_s28 }
   0x5   :  { %16 = vsyncpa [#allocation9], 0  ;;  %s4321_s29 = smov [#allocation5]   ;;  %s22_s10 = sshll.u32 %s4476_s0, 4  ;;  %s23_s10 = int_to_ptr.hbm [resolvable:$true] %s22_s10 }
   0x6   :  { %s34_s30 = sshll.u32 %s4321_s29, 4  ;;  %s4322_s11 = smov 256   ;;  %s35_s30 = int_to_ptr.vmem [resolvable:$true] %s34_s30 }
   0x7   :  { %s4323_s12 = smov 16   ;;  %s4324_s6 = smov [#allocation3]  }
   0x8   :  { %40 = dma.hbm_to_vmem [thread:$0]  %s33_s28, 32768, %s35_s30, [#allocation6], %s4322_s11, %s4322_s11, %s4323_s12  }
   0x9   :  { %s24_s13 = sshll.u32 %s4324_s6, 4  ;;  %s46_s16 = sshll.u32 %s4478_s2, 4  ;;  %s25_s13 = int_to_ptr.vmem [resolvable:$true] %s24_s13  ;;  %s47_s16 = int_to_ptr.hbm [resolvable:$true] %s46_s16 }
   0xa   :  { %27 = dma.hbm_to_vmem [thread:$0]  %s23_s10, 1024, %s25_s13, [#allocation4]  }
   0xb   :  { %s56_s18 = sshll.u32 %s4479_s3, 4  ;;  %s4325_s19 = smov [#allocation7]   ;;  %s57_s18 = int_to_ptr.hbm [resolvable:$true] %s56_s18 }
   0xc   :  { %s48_s20 = sshll.u32 %s4325_s19, 4  ;;  %s4326_s0 = smov [#allocation8]   ;;  %s49_s20 = int_to_ptr.vmem [resolvable:$true] %s48_s20 }
   0xd   :  { %51 = dma.hbm_to_vmem [thread:$0]  %s47_s16, 64, %s49_s20, [#allocation6]  }
   0xe   :  { %s58_s21 = sshll.u32 %s4326_s0, 4  ;;  %s4327_s22 = smov 128   ;;  %s59_s21 = int_to_ptr.vmem [resolvable:$true] %s58_s21 }
   0xf   :  { %s4328_s23 = smov 8  }
  0x10   :  { %64 = dma.hbm_to_vmem [thread:$0]  %s57_s18, 8192, %s59_s21, [#allocation9], %s4327_s22, %s4327_s22, %s4328_s23  }
  0x11   :  { %4315 = dma.done.wait [#allocation4], 1024  }
  0x12   :  { %4316 = vsyncadd [#allocation4], 4294966272 }
  0x13   :  { %4317 = dma.done.wait [#allocation6], 32832  }
  0x14   :  { %4318 = vsyncadd [#allocation6], 4294934464 }
  0x15   :  { %4319 = dma.done.wait [#allocation9], 8192  }
  0x16   :  { %4320 = vsyncadd [#allocation9], 4294959104  ;;  %v2719_v1 = vld [vmem:[#allocation5 + $0xe0] sm:$0xf]  ;;  %v3915_v2 = vld [vmem:[#allocation5 + $0xec] sm:$0xf0] }
  0x17   :  { %v2847_v3 = vld [vmem:[#allocation5 + $0x1e0] sm:$0xf]  ;;  %v2720_v4 = vor.u32 %v3915_v2, %v2719_v1  ;;  %v3947_v5 = vld [vmem:[#allocation5 + $0x1ec] sm:$0xf0]  ;;  %vm2596_vm0 = vcmask 7168  }
  0x18   :  { %v2975_v6 = vld [vmem:[#allocation5 + $0x2e0] sm:$0xf]  ;;  %v3979_v7 = vld [vmem:[#allocation5 + $0x2ec] sm:$0xf0]  ;;  %v2848_v8 = vor.u32 %v3947_v5, %v2847_v3 }
  0x19   :  { %v2976_v9 = vor.u32 %v3979_v7, %v2975_v6  ;;  %v3103_v10 = vld [vmem:[#allocation5 + $0x3e0] sm:$0xf]  ;;  %v4011_v11 = vld [vmem:[#allocation5 + $0x3ec] sm:$0xf0]  ;;  %1649 = vmatpush.bf16.msra.mxu0 %v2720_v4 }
  0x1a   :  { %v2703_v12 = vld [vmem:[#allocation5 + $0xc0] sm:$0xf]  ;;  %v3104_v13 = vor.u32 %v4011_v11, %v3103_v10  ;;  %v3911_v14 = vld [vmem:[#allocation5 + $0xcc] sm:$0xf0]  ;;  %1662 = vmatpush.bf16.msra.mxu1 %v2848_v8 }
  0x1b   :  { %v2831_v15 = vld [vmem:[#allocation5 + $0x1c0] sm:$0xf]  ;;  %v3943_v16 = vld [vmem:[#allocation5 + $0x1cc] sm:$0xf0]  ;;  %1675 = vmatpush.bf16.msra.mxu2 %v2976_v9  ;;  %v2704_v17 = vor.u32 %v3911_v14, %v2703_v12 }
  0x1c   :  { %v2832_v18 = vor.u32 %v3943_v16, %v2831_v15  ;;  %v2959_v19 = vld [vmem:[#allocation5 + $0x2c0] sm:$0xf]  ;;  %v3975_v20 = vld [vmem:[#allocation5 + $0x2cc] sm:$0xf0]  ;;  %1688 = vmatpush.bf16.msra.mxu3 %v3104_v13 }
  0x1d   :  { %v3087_v21 = vld [vmem:[#allocation5 + $0x3c0] sm:$0xf]  ;;  %v2960_v22 = vor.u32 %v3975_v20, %v2959_v19  ;;  %v4007_v23 = vld [vmem:[#allocation5 + $0x3cc] sm:$0xf0]  ;;  %1650 = vmatpush.bf16.msra.mxu0 %v2704_v17 }
  0x1e   :  { %v2687_v24 = vld [vmem:[#allocation5 + $0xa0] sm:$0xf]  ;;  %v3907_v25 = vld [vmem:[#allocation5 + $0xac] sm:$0xf0]  ;;  %v3088_v26 = vor.u32 %v4007_v23, %v3087_v21  ;;  %1663 = vmatpush.bf16.msra.mxu1 %v2832_v18 }
  0x1f   :  { %v2815_v27 = vld [vmem:[#allocation5 + $0x1a0] sm:$0xf]  ;;  %v3939_v28 = vld [vmem:[#allocation5 + $0x1ac] sm:$0xf0]  ;;  %v2688_v30 = vor.u32 %v3907_v25, %v2687_v24  ;;  %1676 = vmatpush.bf16.msra.mxu2 %v2960_v22 }
  0x20   :  { %v2943_v29 = vld [vmem:[#allocation5 + $0x2a0] sm:$0xf]  ;;  %v3971_v31 = vld [vmem:[#allocation5 + $0x2ac] sm:$0xf0]  ;;  %v2816_v34 = vor.u32 %v3939_v28, %v2815_v27  ;;  %1689 = vmatpush.bf16.msra.mxu3 %v3088_v26 }
  0x21   :  { %v3071_v32 = vld [vmem:[#allocation5 + $0x3a0] sm:$0xf]  ;;  %v4003_v33 = vld [vmem:[#allocation5 + $0x3ac] sm:$0xf0]  ;;  %v2944_v35 = vor.u32 %v3971_v31, %v2943_v29  ;;  %1651 = vmatpush.bf16.msra.mxu0 %v2688_v30 }
  0x22   :  { %v2671_v36 = vld [vmem:[#allocation5 + $0x80] sm:$0xf]  ;;  %v3903_v37 = vld [vmem:[#allocation5 + $0x8c] sm:$0xf0]  ;;  %v3072_v39 = vor.u32 %v4003_v33, %v3071_v32  ;;  %1664 = vmatpush.bf16.msra.mxu1 %v2816_v34 }
  0x23   :  { %v2799_v38 = vld [vmem:[#allocation5 + $0x180] sm:$0xf]  ;;  %v3935_v40 = vld [vmem:[#allocation5 + $0x18c] sm:$0xf0]  ;;  %v2672_v45 = vor.u32 %v3903_v37, %v2671_v36  ;;  %1677 = vmatpush.bf16.msra.mxu2 %v2944_v35 }
  0x24   :  { %v2927_v41 = vld [vmem:[#allocation5 + $0x280] sm:$0xf]  ;;  %v3967_v42 = vld [vmem:[#allocation5 + $0x28c] sm:$0xf0]  ;;  %v2800_v46 = vor.u32 %v3935_v40, %v2799_v38  ;;  %1690 = vmatpush.bf16.msra.mxu3 %v3072_v39 }
  0x25   :  { %v3055_v43 = vld [vmem:[#allocation5 + $0x380] sm:$0xf]  ;;  %v3999_v44 = vld [vmem:[#allocation5 + $0x38c] sm:$0xf0]  ;;  %v2928_v47 = vor.u32 %v3967_v42, %v2927_v41  ;;  %1652 = vmatpush.bf16.msra.mxu0 %v2672_v45 }
  0x26   :  { %v2655_v48 = vld [vmem:[#allocation5 + $0x60] sm:$0xf]  ;;  %v3899_v49 = vld [vmem:[#allocation5 + $0x6c] sm:$0xf0]  ;;  %v3056_v51 = vor.u32 %v3999_v44, %v3055_v43  ;;  %1665 = vmatpush.bf16.msra.mxu1 %v2800_v46 }
  0x27   :  { %v2783_v50 = vld [vmem:[#allocation5 + $0x160] sm:$0xf]  ;;  %v3931_v52 = vld [vmem:[#allocation5 + $0x16c] sm:$0xf0]  ;;  %v2656_v57 = vor.u32 %v3899_v49, %v2655_v48  ;;  %1678 = vmatpush.bf16.msra.mxu2 %v2928_v47 }
  0x28   :  { %v2911_v53 = vld [vmem:[#allocation5 + $0x260] sm:$0xf]  ;;  %v3963_v54 = vld [vmem:[#allocation5 + $0x26c] sm:$0xf0]  ;;  %v2784_v58 = vor.u32 %v3931_v52, %v2783_v50  ;;  %1691 = vmatpush.bf16.msra.mxu3 %v3056_v51 }
  0x29   :  { %v3039_v55 = vld [vmem:[#allocation5 + $0x360] sm:$0xf]  ;;  %v3995_v56 = vld [vmem:[#allocation5 + $0x36c] sm:$0xf0]  ;;  %v2912_v59 = vor.u32 %v3963_v54, %v2911_v53  ;;  %1653 = vmatpush.bf16.msra.mxu0 %v2656_v57 }
  0x2a   :  { %v2639_v60 = vld [vmem:[#allocation5 + $0x40] sm:$0xf]  ;;  %v3895_v61 = vld [vmem:[#allocation5 + $0x4c] sm:$0xf0]  ;;  %v3040_v63 = vor.u32 %v3995_v56, %v3039_v55  ;;  %1666 = vmatpush.bf16.msra.mxu1 %v2784_v58 }
  0x2b   :  { %v2767_v62 = vld [vmem:[#allocation5 + $0x140] sm:$0xf]  ;;  %v3927_v0 = vld [vmem:[#allocation5 + $0x14c] sm:$0xf0]  ;;  %v2640_v5 = vor.u32 %v3895_v61, %v2639_v60  ;;  %1679 = vmatpush.bf16.msra.mxu2 %v2912_v59 }
  0x2c   :  { %v2895_v1 = vld [vmem:[#allocation5 + $0x240] sm:$0xf]  ;;  %v3959_v2 = vld [vmem:[#allocation5 + $0x24c] sm:$0xf0]  ;;  %v2768_v6 = vor.u32 %v3927_v0, %v2767_v62  ;;  %1692 = vmatpush.bf16.msra.mxu3 %v3040_v63 }
  0x2d   :  { %v3023_v3 = vld [vmem:[#allocation5 + $0x340] sm:$0xf]  ;;  %v3991_v4 = vld [vmem:[#allocation5 + $0x34c] sm:$0xf0]  ;;  %v2896_v7 = vor.u32 %v3959_v2, %v2895_v1  ;;  %1654 = vmatpush.bf16.msra.mxu0 %v2640_v5 }
  0x2e   :  { %v2623_v8 = vld [vmem:[#allocation5 + $0x20] sm:$0xf]  ;;  %v3891_v9 = vld [vmem:[#allocation5 + $0x2c] sm:$0xf0]  ;;  %v3024_v11 = vor.u32 %v3991_v4, %v3023_v3  ;;  %1667 = vmatpush.bf16.msra.mxu1 %v2768_v6 }
  0x2f   :  { %v2751_v10 = vld [vmem:[#allocation5 + $0x120] sm:$0xf]  ;;  %v3923_v12 = vld [vmem:[#allocation5 + $0x12c] sm:$0xf0]  ;;  %v2624_v17 = vor.u32 %v3891_v9, %v2623_v8  ;;  %1680 = vmatpush.bf16.msra.mxu2 %v2896_v7 }
  0x30   :  { %v2879_v13 = vld [vmem:[#allocation5 + $0x220] sm:$0xf]  ;;  %v3955_v14 = vld [vmem:[#allocation5 + $0x22c] sm:$0xf0]  ;;  %v2752_v20 = vor.u32 %v3923_v12, %v2751_v10  ;;  %1693 = vmatpush.bf16.msra.mxu3 %v3024_v11  ;;  %v90_v11 = vld [vmem:[#allocation3 + $0x18] sm:$0xff] }
  0x31   :  { %v3007_v15 = vld [vmem:[#allocation5 + $0x320] sm:$0xf]  ;;  %v3987_v16 = vld [vmem:[#allocation5 + $0x32c] sm:$0xf0]  ;;  %v2880_v21 = vor.u32 %v3955_v14, %v2879_v13  ;;  %1655 = vmatpush.bf16.msra.mxu0 %v2624_v17  ;;  %v88_v12 = vld [vmem:[#allocation3 + $0x8] sm:$0xff]  ;;  %v4389_v17 = vpack.c.bf16 %v90_v11, %v90_v11 }
  0x32   :  { %v2607_v18 = vld [vmem:[#allocation5] sm:$0xf]  ;;  %v3887_v19 = vld [vmem:[#allocation5 + $0xc] sm:$0xf0]  ;;  %v3008_v25 = vor.u32 %v3987_v16, %v3007_v15  ;;  %1668 = vmatpush.bf16.msra.mxu1 %v2752_v20  ;;  %v2849_v11 = vld [vmem:[#allocation5 + $0x1f0] sm:$0xf0] }
  0x33   :  { %v2735_v22 = vld [vmem:[#allocation5 + $0x100] sm:$0xf]  ;;  %v3919_v23 = vld [vmem:[#allocation5 + $0x10c] sm:$0xf0]  ;;  %v2608_v32 = vor.u32 %v3887_v19, %v2607_v18  ;;  %1681 = vmatpush.bf16.msra.mxu2 %v2880_v21  ;;  %v4391_v18 = vpack.c.bf16 %v88_v12, %v88_v12  ;;  %v3977_v12 = vld [vmem:[#allocation5 + $0x2e4] sm:$0xf] }
  0x34   :  { %v2863_v24 = vld [vmem:[#allocation5 + $0x200] sm:$0xf]  ;;  %v3951_v26 = vld [vmem:[#allocation5 + $0x20c] sm:$0xf0]  ;;  %v2736_v36 = vor.u32 %v3919_v23, %v2735_v22  ;;  %1694 = vmatpush.bf16.msra.mxu3 %v3008_v25 }
  0x35   :  { %v2991_v27 = vld [vmem:[#allocation5 + $0x300] sm:$0xf]  ;;  %v3983_v28 = vld [vmem:[#allocation5 + $0x30c] sm:$0xf0]  ;;  %v2864_v37 = vor.u32 %v3951_v26, %v2863_v24  ;;  %1656 = vmatpush.bf16.msra.mxu0 %v2608_v32 }
  0x36   :  { %v3231_v29 = vld [vmem:[#allocation5 + $0x4e0] sm:$0xf]  ;;  %v4043_v30 = vld [vmem:[#allocation5 + $0x4ec] sm:$0xf0]  ;;  %v2992_v40 = vor.u32 %v3983_v28, %v2991_v27  ;;  %1669 = vmatpush.bf16.msra.mxu1 %v2736_v36 }
  0x37   :  { %v3359_v31 = vld [vmem:[#allocation5 + $0x5e0] sm:$0xf]  ;;  %v4075_v33 = vld [vmem:[#allocation5 + $0x5ec] sm:$0xf0]  ;;  %v3232_v41 = vor.u32 %v4043_v30, %v3231_v29  ;;  %1682 = vmatpush.bf16.msra.mxu2 %v2864_v37 }
  0x38   :  { %v3487_v34 = vld [vmem:[#allocation5 + $0x6e0] sm:$0xf]  ;;  %v4107_v35 = vld [vmem:[#allocation5 + $0x6ec] sm:$0xf0]  ;;  %v3360_v42 = vor.u32 %v4075_v33, %v3359_v31  ;;  %1695 = vmatpush.bf16.msra.mxu3 %v2992_v40 }
  0x39   :  { %v3615_v38 = vld [vmem:[#allocation5 + $0x7e0] sm:$0xf]  ;;  %v4139_v39 = vld [vmem:[#allocation5 + $0x7ec] sm:$0xf0]  ;;  %v3488_v43 = vor.u32 %v4107_v35, %v3487_v34  ;;  %1701 = vmatpush.bf16.msrb.mxu0 %v3232_v41  ;;  %1670 = vmatmul.bf16.vlgmr.msra.gmra.mxu1 %v4391_v18 }
  0x3a   :  { %v3215_v44 = vld [vmem:[#allocation5 + $0x4c0] sm:$0xf]  ;;  %v4039_v45 = vld [vmem:[#allocation5 + $0x4cc] sm:$0xf0]  ;;  %v3616_v47 = vor.u32 %v4139_v39, %v3615_v38  ;;  %1714 = vmatpush.bf16.msrb.mxu1 %v3360_v42 }
  0x3b   :  { %v3343_v46 = vld [vmem:[#allocation5 + $0x5c0] sm:$0xf]  ;;  %v4071_v48 = vld [vmem:[#allocation5 + $0x5cc] sm:$0xf0]  ;;  %v3216_v53 = vor.u32 %v4039_v45, %v3215_v44  ;;  %1727 = vmatpush.bf16.msrb.mxu2 %v3488_v43  ;;  %1696 = vmatmul.bf16.vlgmr.msra.gmra.mxu3 %v4389_v17 }
  0x3c   :  { %v3471_v49 = vld [vmem:[#allocation5 + $0x6c0] sm:$0xf]  ;;  %v4103_v50 = vld [vmem:[#allocation5 + $0x6cc] sm:$0xf0]  ;;  %v3344_v55 = vor.u32 %v4071_v48, %v3343_v46  ;;  %1740 = vmatpush.bf16.msrb.mxu3 %v3616_v47 }
  0x3d   :  { %v3599_v51 = vld [vmem:[#allocation5 + $0x7c0] sm:$0xf]  ;;  %v4135_v52 = vld [vmem:[#allocation5 + $0x7cc] sm:$0xf0]  ;;  %v3472_v56 = vor.u32 %v4103_v50, %v3471_v49  ;;  %1702 = vmatpush.bf16.msrb.mxu0 %v3216_v53 }
  0x3e   :  { %v3199_v54 = vld [vmem:[#allocation5 + $0x4a0] sm:$0xf]  ;;  %v4035_v57 = vld [vmem:[#allocation5 + $0x4ac] sm:$0xf0]  ;;  %v3600_v60 = vor.u32 %v4135_v52, %v3599_v51  ;;  %1715 = vmatpush.bf16.msrb.mxu1 %v3344_v55 }
  0x3f   :  { %v3327_v58 = vld [vmem:[#allocation5 + $0x5a0] sm:$0xf]  ;;  %v89_v59 = vld [vmem:[#allocation3 + $0x10] sm:$0xff]  ;;  %v3200_v3 = vor.u32 %v4035_v57, %v3199_v54  ;;  %1728 = vmatpush.bf16.msrb.mxu2 %v3472_v56 }
  0x40   :  { %v4067_v61 = vld [vmem:[#allocation5 + $0x5ac] sm:$0xf0]  ;;  %v3455_v62 = vld [vmem:[#allocation5 + $0x6a0] sm:$0xf]  ;;  %v4384_v0 = vpack.c.bf16 %v89_v59, %v89_v59  ;;  %1741 = vmatpush.bf16.msrb.mxu3 %v3600_v60 }
  0x41   :  { %v4099_v63 = vld [vmem:[#allocation5 + $0x6ac] sm:$0xf0]  ;;  %v3583_v1 = vld [vmem:[#allocation5 + $0x7a0] sm:$0xf]  ;;  %v3328_v7 = vor.u32 %v4067_v61, %v3327_v58  ;;  %1703 = vmatpush.bf16.msrb.mxu0 %v3200_v3 }
  0x42   :  { %v4131_v2 = vld [vmem:[#allocation5 + $0x7ac] sm:$0xf0]  ;;  %v3183_v4 = vld [vmem:[#allocation5 + $0x480] sm:$0xf]  ;;  %1683 = vmatmul.bf16.vlgmr.msra.gmra.mxu2 %v4384_v0  ;;  %v3456_v8 = vor.u32 %v4099_v63, %v3455_v62 }
  0x43   :  { %v4031_v5 = vld [vmem:[#allocation5 + $0x48c] sm:$0xf0]  ;;  %v87_v6 = vld [vmem:[#allocation3] sm:$0xff]  ;;  %v3584_v13 = vor.u32 %v4131_v2, %v3583_v1  ;;  %1716 = vmatpush.bf16.msrb.mxu1 %v3328_v7  ;;  %v2721_v7 = vld [vmem:[#allocation5 + $0xf0] sm:$0xf0] }
  0x44   :  { %v3311_v9 = vld [vmem:[#allocation5 + $0x580] sm:$0xf]  ;;  %v4387_v10 = vpack.c.bf16 %v87_v6, %v87_v6  ;;  %v4063_v14 = vld [vmem:[#allocation5 + $0x58c] sm:$0xf0]  ;;  %v3184_v21 = vor.u32 %v4031_v5, %v3183_v4  ;;  %1729 = vmatpush.bf16.msrb.mxu2 %v3456_v8  ;;  %v3913_v6 = vld [vmem:[#allocation5 + $0xe4] sm:$0xf] }
  0x45   :  { %v3439_v15 = vld [vmem:[#allocation5 + $0x680] sm:$0xf]  ;;  %v4095_v16 = vld [vmem:[#allocation5 + $0x68c] sm:$0xf0]  ;;  %v3312_v22 = vor.u32 %v4063_v14, %v3311_v9  ;;  %1742 = vmatpush.bf16.msrb.mxu3 %v3584_v13  ;;  %v3945_v8 = vld [vmem:[#allocation5 + $0x1e4] sm:$0xf] }
  0x46   :  { %v3567_v19 = vld [vmem:[#allocation5 + $0x780] sm:$0xf]  ;;  %v4127_v20 = vld [vmem:[#allocation5 + $0x78c] sm:$0xf0]  ;;  %1657 = vmatmul.bf16.vlgmr.msra.gmra.mxu0 %v4387_v10  ;;  %v3440_v23 = vor.u32 %v4095_v16, %v3439_v15  ;;  %v2977_v13 = vld [vmem:[#allocation5 + $0x2f0] sm:$0xf0] }
  0x47   :  { %v3167_v24 = vld [vmem:[#allocation5 + $0x460] sm:$0xf]  ;;  %v4027_v25 = vld [vmem:[#allocation5 + $0x46c] sm:$0xf0]  ;;  %v3568_v27 = vor.u32 %v4127_v20, %v3567_v19  ;;  %1704 = vmatpush.bf16.msrb.mxu0 %v3184_v21  ;;  %1717 = vmatpush.bf16.msrb.mxu1 %v3312_v22  ;;  %v4009_v16 = vld [vmem:[#allocation5 + $0x3e4] sm:$0xf]  ;;  %v2724_v22 = vor.u32 %v3913_v6, %v2721_v7 }
  0x48   :  { %v3295_v26 = vld [vmem:[#allocation5 + $0x560] sm:$0xf]  ;;  %v4059_v28 = vld [vmem:[#allocation5 + $0x56c] sm:$0xf0]  ;;  %v3168_v33 = vor.u32 %v4027_v25, %v3167_v24  ;;  %1730 = vmatpush.bf16.msrb.mxu2 %v3440_v23  ;;  %v3105_v19 = vld [vmem:[#allocation5 + $0x3f0] sm:$0xf0] }
  0x49   :  { %v3423_v29 = vld [vmem:[#allocation5 + $0x660] sm:$0xf]  ;;  %v4091_v30 = vld [vmem:[#allocation5 + $0x66c] sm:$0xf0]  ;;  %v3296_v34 = vor.u32 %v4059_v28, %v3295_v26  ;;  %1743 = vmatpush.bf16.msrb.mxu3 %v3568_v27  ;;  %v3909_v23 = vld [vmem:[#allocation5 + $0xc4] sm:$0xf]  ;;  %v2852_v26 = vor.u32 %v3945_v8, %v2849_v11  ;;  %v2980_v27 = vor.u32 %v3977_v12, %v2977_v13 }
  0x4a   :  { %v3551_v31 = vld [vmem:[#allocation5 + $0x760] sm:$0xf]  ;;  %v4123_v32 = vld [vmem:[#allocation5 + $0x76c] sm:$0xf0]  ;;  %v3424_v35 = vor.u32 %v4091_v30, %v3423_v29  ;;  %v94_v25 = vld [vmem:[#allocation3 + $0x38] sm:$0xff] }
  0x4b   :  { %v3151_v36 = vld [vmem:[#allocation5 + $0x440] sm:$0xf]  ;;  %v4023_v37 = vld [vmem:[#allocation5 + $0x44c] sm:$0xf0]  ;;  %v3552_v39 = vor.u32 %v4123_v32, %v3551_v31  ;;  %1705 = vmatpush.bf16.msrb.mxu0 %v3168_v33  ;;  %1718 = vmatpush.bf16.msrb.mxu1 %v3296_v34  ;;  %v2705_v28 = vld [vmem:[#allocation5 + $0xd0] sm:$0xf0]  ;;  %v3108_v31 = vor.u32 %v4009_v16, %v3105_v19 }
  0x4c   :  { %v3279_v38 = vld [vmem:[#allocation5 + $0x540] sm:$0xf]  ;;  %v4055_v40 = vld [vmem:[#allocation5 + $0x54c] sm:$0xf0]  ;;  %v3152_v45 = vor.u32 %v4023_v37, %v3151_v36  ;;  %1731 = vmatpush.bf16.msrb.mxu2 %v3424_v35  ;;  %v3941_v29 = vld [vmem:[#allocation5 + $0x1c4] sm:$0xf] }
  0x4d   :  { %v3407_v41 = vld [vmem:[#allocation5 + $0x640] sm:$0xf]  ;;  %v4087_v42 = vld [vmem:[#allocation5 + $0x64c] sm:$0xf0]  ;;  %v3280_v46 = vor.u32 %v4055_v40, %v3279_v38  ;;  %1744 = vmatpush.bf16.msrb.mxu3 %v3552_v39  ;;  %v92_v30 = vld [vmem:[#allocation3 + $0x28] sm:$0xff]  ;;  %v4400_v39 = vpack.c.bf16 %v94_v25, %v94_v25  ;;  %v2708_v40 = vor.u32 %v3909_v23, %v2705_v28 }
  0x4e   :  { %v3535_v43 = vld [vmem:[#allocation5 + $0x740] sm:$0xf]  ;;  %v4119_v44 = vld [vmem:[#allocation5 + $0x74c] sm:$0xf0]  ;;  %v3408_v47 = vor.u32 %v4087_v42, %v3407_v41  ;;  %v2833_v32 = vld [vmem:[#allocation5 + $0x1d0] sm:$0xf0]  ;;  %v4402_v41 = vpack.c.bf16 %v92_v30, %v92_v30 }
  0x4f   :  { %v3135_v48 = vld [vmem:[#allocation5 + $0x420] sm:$0xf]  ;;  %v4019_v49 = vld [vmem:[#allocation5 + $0x42c] sm:$0xf0]  ;;  %v3536_v51 = vor.u32 %v4119_v44, %v3535_v43  ;;  %1706 = vmatpush.bf16.msrb.mxu0 %v3152_v45  ;;  %1719 = vmatpush.bf16.msrb.mxu1 %v3280_v46  ;;  %v3973_v33 = vld [vmem:[#allocation5 + $0x2c4] sm:$0xf]  ;;  %v2836_v42 = vor.u32 %v3941_v29, %v2833_v32 }
  0x50   :  { %v3263_v50 = vld [vmem:[#allocation5 + $0x520] sm:$0xf]  ;;  %v4051_v52 = vld [vmem:[#allocation5 + $0x52c] sm:$0xf0]  ;;  %v3136_v57 = vor.u32 %v4019_v49, %v3135_v48  ;;  %1732 = vmatpush.bf16.msrb.mxu2 %v3408_v47  ;;  %v2961_v34 = vld [vmem:[#allocation5 + $0x2d0] sm:$0xf0] }
  0x51   :  { %v3391_v53 = vld [vmem:[#allocation5 + $0x620] sm:$0xf]  ;;  %v4083_v54 = vld [vmem:[#allocation5 + $0x62c] sm:$0xf0]  ;;  %v3264_v60 = vor.u32 %v4051_v52, %v3263_v50  ;;  %1745 = vmatpush.bf16.msrb.mxu3 %v3536_v51  ;;  %v4005_v36 = vld [vmem:[#allocation5 + $0x3c4] sm:$0xf]  ;;  %v2964_v43 = vor.u32 %v3973_v33, %v2961_v34 }
  0x52   :  { %v3519_v55 = vld [vmem:[#allocation5 + $0x720] sm:$0xf]  ;;  %v4115_v56 = vld [vmem:[#allocation5 + $0x72c] sm:$0xf0]  ;;  %v3392_v61 = vor.u32 %v4083_v54, %v3391_v53  ;;  %v3089_v37 = vld [vmem:[#allocation5 + $0x3d0] sm:$0xf0] }
  0x53   :  { %v3119_v58 = vld [vmem:[#allocation5 + $0x400] sm:$0xf]  ;;  %v4015_v59 = vld [vmem:[#allocation5 + $0x40c] sm:$0xf0]  ;;  %v3520_v2 = vor.u32 %v4115_v56, %v3519_v55  ;;  %1707 = vmatpush.bf16.msrb.mxu0 %v3136_v57  ;;  %1720 = vmatpush.bf16.msrb.mxu1 %v3264_v60  ;;  %v3905_v44 = vld [vmem:[#allocation5 + $0xa4] sm:$0xf]  ;;  %v3092_v47 = vor.u32 %v4005_v36, %v3089_v37 }
  0x54   :  { %v3247_v62 = vld [vmem:[#allocation5 + $0x500] sm:$0xf]  ;;  %v4047_v63 = vld [vmem:[#allocation5 + $0x50c] sm:$0xf0]  ;;  %v3120_v9 = vor.u32 %v4015_v59, %v3119_v58  ;;  %1733 = vmatpush.bf16.msrb.mxu2 %v3392_v61  ;;  %v2689_v45 = vld [vmem:[#allocation5 + $0xb0] sm:$0xf0] }
  0x55   :  { %v3375_v1 = vld [vmem:[#allocation5 + $0x600] sm:$0xf]  ;;  %v4079_v3 = vld [vmem:[#allocation5 + $0x60c] sm:$0xf0]  ;;  %v3248_v14 = vor.u32 %v4047_v63, %v3247_v62  ;;  %1746 = vmatpush.bf16.msrb.mxu3 %v3520_v2  ;;  %v3937_v46 = vld [vmem:[#allocation5 + $0x1a4] sm:$0xf]  ;;  %v2692_v53 = vor.u32 %v3905_v44, %v2689_v45 }
  0x56   :  { %v3503_v4 = vld [vmem:[#allocation5 + $0x700] sm:$0xf]  ;;  %v4111_v5 = vld [vmem:[#allocation5 + $0x70c] sm:$0xf0]  ;;  %v3376_v15 = vor.u32 %v4079_v3, %v3375_v1  ;;  %v2817_v48 = vld [vmem:[#allocation5 + $0x1b0] sm:$0xf0] }
  0x57   :  { %v93_v20 = vld [vmem:[#allocation3 + $0x30] sm:$0xff]  ;;  %v3504_v21 = vor.u32 %v4111_v5, %v3503_v4  ;;  %v91_v24 = vld [vmem:[#allocation3 + $0x20] sm:$0xff]  ;;  %1708 = vmatpush.bf16.msrb.mxu0 %v3120_v9  ;;  %1721 = vmatpush.bf16.msrb.mxu1 %v3248_v14  ;;  %v2820_v54 = vor.u32 %v3937_v46, %v2817_v48 }
  0x58   :  { %v4396_v35 = vpack.c.bf16 %v93_v20, %v93_v20  ;;  %1734 = vmatpush.bf16.msrb.mxu2 %v3376_v15  ;;  %v4398_v38 = vpack.c.bf16 %v91_v24, %v91_v24  ;;  %v3969_v49 = vld [vmem:[#allocation5 + $0x2a4] sm:$0xf]  ;;  %v2945_v50 = vld [vmem:[#allocation5 + $0x2b0] sm:$0xf0] }
  0x59   :  { %1747 = vmatpush.bf16.msrb.mxu3 %v3504_v21  ;;  %v4001_v51 = vld [vmem:[#allocation5 + $0x3a4] sm:$0xf]  ;;  %v3073_v52 = vld [vmem:[#allocation5 + $0x3b0] sm:$0xf0]  ;;  %v2948_v55 = vor.u32 %v3969_v49, %v2945_v50 }
  0x5a   :  { %1709 = vmatmul.bf16.vlgmr.msrb.gmra.mxu0 %v4398_v38  ;;  %1722 = vmatmul.bf16.vlgmr.msrb.gmra.mxu1 %v4402_v41  ;;  %v3901_v56 = vld [vmem:[#allocation5 + $0x84] sm:$0xf]  ;;  %v2673_v57 = vld [vmem:[#allocation5 + $0x90] sm:$0xf0]  ;;  %v3076_v59 = vor.u32 %v4001_v51, %v3073_v52 }
  0x5b   :  { %1753 = vmatpush.bf16.msra.mxu0 %v2724_v22  ;;  %1766 = vmatpush.bf16.msra.mxu1 %v2852_v26  ;;  %v3933_v58 = vld [vmem:[#allocation5 + $0x184] sm:$0xf]  ;;  %v2801_v60 = vld [vmem:[#allocation5 + $0x190] sm:$0xf0]  ;;  %v2676_v2 = vor.u32 %v3901_v56, %v2673_v57 }
  0x5c   :  { %1779 = vmatpush.bf16.msra.mxu2 %v2980_v27  ;;  %1748 = vmatmul.bf16.vlgmr.msrb.gmra.mxu3 %v4400_v39  ;;  %v3965_v61 = vld [vmem:[#allocation5 + $0x284] sm:$0xf]  ;;  %v2929_v62 = vld [vmem:[#allocation5 + $0x290] sm:$0xf0]  ;;  %v2804_v3 = vor.u32 %v3933_v58, %v2801_v60 }
  0x5d   :  { %1792 = vmatpush.bf16.msra.mxu3 %v3108_v31  ;;  %1735 = vmatmul.bf16.vlgmr.msrb.gmra.mxu2 %v4396_v35  ;;  %v3997_v63 = vld [vmem:[#allocation5 + $0x384] sm:$0xf]  ;;  %v3057_v1 = vld [vmem:[#allocation5 + $0x390] sm:$0xf0]  ;;  %v2932_v4 = vor.u32 %v3965_v61, %v2929_v62 }
  0x5e   :  { %v3897_v5 = vld [vmem:[#allocation5 + $0x64] sm:$0xf]  ;;  %v2657_v6 = vld [vmem:[#allocation5 + $0x70] sm:$0xf0]  ;;  %v3060_v8 = vor.u32 %v3997_v63, %v3057_v1 }
  0x5f   :  { %1754 = vmatpush.bf16.msra.mxu0 %v2708_v40  ;;  %1767 = vmatpush.bf16.msra.mxu1 %v2836_v42  ;;  %v3929_v7 = vld [vmem:[#allocation5 + $0x164] sm:$0xf]  ;;  %v2785_v9 = vld [vmem:[#allocation5 + $0x170] sm:$0xf0]  ;;  %v2660_v15 = vor.u32 %v3897_v5, %v2657_v6 }
  0x60   :  { %1780 = vmatpush.bf16.msra.mxu2 %v2964_v43  ;;  %v3961_v11 = vld [vmem:[#allocation5 + $0x264] sm:$0xf]  ;;  %v2913_v12 = vld [vmem:[#allocation5 + $0x270] sm:$0xf0]  ;;  %v2788_v16 = vor.u32 %v3929_v7, %v2785_v9 }
  0x61   :  { %1793 = vmatpush.bf16.msra.mxu3 %v3092_v47  ;;  %v3993_v13 = vld [vmem:[#allocation5 + $0x364] sm:$0xf]  ;;  %v3041_v14 = vld [vmem:[#allocation5 + $0x370] sm:$0xf0]  ;;  %v2916_v19 = vor.u32 %v3961_v11, %v2913_v12 }
  0x62   :  { %v3893_v20 = vld [vmem:[#allocation5 + $0x44] sm:$0xf]  ;;  %v2641_v21 = vld [vmem:[#allocation5 + $0x50] sm:$0xf0]  ;;  %v3044_v23 = vor.u32 %v3993_v13, %v3041_v14 }
  0x63   :  { %1755 = vmatpush.bf16.msra.mxu0 %v2692_v53  ;;  %1768 = vmatpush.bf16.msra.mxu1 %v2820_v54  ;;  %v3925_v22 = vld [vmem:[#allocation5 + $0x144] sm:$0xf]  ;;  %v2769_v24 = vld [vmem:[#allocation5 + $0x150] sm:$0xf0]  ;;  %v2644_v29 = vor.u32 %v3893_v20, %v2641_v21 }
  0x64   :  { %1781 = vmatpush.bf16.msra.mxu2 %v2948_v55  ;;  %v3957_v25 = vld [vmem:[#allocation5 + $0x244] sm:$0xf]  ;;  %v2897_v26 = vld [vmem:[#allocation5 + $0x250] sm:$0xf0]  ;;  %v2772_v30 = vor.u32 %v3925_v22, %v2769_v24 }
  0x65   :  { %1794 = vmatpush.bf16.msra.mxu3 %v3076_v59  ;;  %v3989_v27 = vld [vmem:[#allocation5 + $0x344] sm:$0xf]  ;;  %v3025_v28 = vld [vmem:[#allocation5 + $0x350] sm:$0xf0]  ;;  %v2900_v31 = vor.u32 %v3957_v25, %v2897_v26 }
  0x66   :  { %v3889_v32 = vld [vmem:[#allocation5 + $0x24] sm:$0xf]  ;;  %v2625_v33 = vld [vmem:[#allocation5 + $0x30] sm:$0xf0]  ;;  %v3028_v36 = vor.u32 %v3989_v27, %v3025_v28 }
  0x67   :  { %1756 = vmatpush.bf16.msra.mxu0 %v2676_v2  ;;  %1769 = vmatpush.bf16.msra.mxu1 %v2804_v3  ;;  %v3921_v34 = vld [vmem:[#allocation5 + $0x124] sm:$0xf]  ;;  %v2753_v37 = vld [vmem:[#allocation5 + $0x130] sm:$0xf0]  ;;  %v2628_v45 = vor.u32 %v3889_v32, %v2625_v33 }
  0x68   :  { %1782 = vmatpush.bf16.msra.mxu2 %v2932_v4  ;;  %v3953_v40 = vld [vmem:[#allocation5 + $0x224] sm:$0xf]  ;;  %v2881_v42 = vld [vmem:[#allocation5 + $0x230] sm:$0xf0]  ;;  %v2756_v48 = vor.u32 %v3921_v34, %v2753_v37 }
  0x69   :  { %1795 = vmatpush.bf16.msra.mxu3 %v3060_v8  ;;  %v3985_v43 = vld [vmem:[#allocation5 + $0x324] sm:$0xf]  ;;  %v3009_v44 = vld [vmem:[#allocation5 + $0x330] sm:$0xf0]  ;;  %v2884_v49 = vor.u32 %v3953_v40, %v2881_v42 }
  0x6a   :  { %v3885_v46 = vld [vmem:[#allocation5 + $0x4] sm:$0xf]  ;;  %v2609_v47 = vld [vmem:[#allocation5 + $0x10] sm:$0xf0]  ;;  %v3012_v53 = vor.u32 %v3985_v43, %v3009_v44 }
  0x6b   :  { %1757 = vmatpush.bf16.msra.mxu0 %v2660_v15  ;;  %1770 = vmatpush.bf16.msra.mxu1 %v2788_v16  ;;  %v3917_v50 = vld [vmem:[#allocation5 + $0x104] sm:$0xf]  ;;  %v2737_v51 = vld [vmem:[#allocation5 + $0x110] sm:$0xf0]  ;;  %v2612_v60 = vor.u32 %v3885_v46, %v2609_v47 }
  0x6c   :  { %1783 = vmatpush.bf16.msra.mxu2 %v2916_v19  ;;  %v3949_v52 = vld [vmem:[#allocation5 + $0x204] sm:$0xf]  ;;  %v2865_v54 = vld [vmem:[#allocation5 + $0x210] sm:$0xf0]  ;;  %v2740_v1 = vor.u32 %v3917_v50, %v2737_v51 }
  0x6d   :  { %1796 = vmatpush.bf16.msra.mxu3 %v3044_v23  ;;  %v3981_v55 = vld [vmem:[#allocation5 + $0x304] sm:$0xf]  ;;  %v2993_v56 = vld [vmem:[#allocation5 + $0x310] sm:$0xf0]  ;;  %v2868_v2 = vor.u32 %v3949_v52, %v2865_v54 }
  0x6e   :  { %v4041_v57 = vld [vmem:[#allocation5 + $0x4e4] sm:$0xf]  ;;  %v3233_v58 = vld [vmem:[#allocation5 + $0x4f0] sm:$0xf0]  ;;  %v2996_v5 = vor.u32 %v3981_v55, %v2993_v56 }
  0x6f   :  { %1758 = vmatpush.bf16.msra.mxu0 %v2644_v29  ;;  %1771 = vmatpush.bf16.msra.mxu1 %v2772_v30  ;;  %v4073_v59 = vld [vmem:[#allocation5 + $0x5e4] sm:$0xf]  ;;  %v3361_v61 = vld [vmem:[#allocation5 + $0x5f0] sm:$0xf0]  ;;  %v3236_v6 = vor.u32 %v4041_v57, %v3233_v58 }
  0x70   :  { %1784 = vmatpush.bf16.msra.mxu2 %v2900_v31  ;;  %v4105_v62 = vld [vmem:[#allocation5 + $0x6e4] sm:$0xf]  ;;  %v3489_v63 = vld [vmem:[#allocation5 + $0x6f0] sm:$0xf0]  ;;  %v3364_v7 = vor.u32 %v4073_v59, %v3361_v61 }
  0x71   :  { %1797 = vmatpush.bf16.msra.mxu3 %v3028_v36  ;;  %v4137_v3 = vld [vmem:[#allocation5 + $0x7e4] sm:$0xf]  ;;  %v3617_v4 = vld [vmem:[#allocation5 + $0x7f0] sm:$0xf0]  ;;  %v3492_v8 = vor.u32 %v4105_v62, %v3489_v63 }
  0x72   :  { %v4037_v9 = vld [vmem:[#allocation5 + $0x4c4] sm:$0xf]  ;;  %v3217_v11 = vld [vmem:[#allocation5 + $0x4d0] sm:$0xf0]  ;;  %v3620_v13 = vor.u32 %v4137_v3, %v3617_v4 }
  0x73   :  { %1759 = vmatpush.bf16.msra.mxu0 %v2628_v45  ;;  %1772 = vmatpush.bf16.msra.mxu1 %v2756_v48  ;;  %v4069_v12 = vld [vmem:[#allocation5 + $0x5c4] sm:$0xf]  ;;  %v3345_v14 = vld [vmem:[#allocation5 + $0x5d0] sm:$0xf0]  ;;  %v3220_v21 = vor.u32 %v4037_v9, %v3217_v11 }
  0x74   :  { %1785 = vmatpush.bf16.msra.mxu2 %v2884_v49  ;;  %v4101_v15 = vld [vmem:[#allocation5 + $0x6c4] sm:$0xf]  ;;  %v3473_v16 = vld [vmem:[#allocation5 + $0x6d0] sm:$0xf0]  ;;  %v3348_v22 = vor.u32 %v4069_v12, %v3345_v14 }
  0x75   :  { %1798 = vmatpush.bf16.msra.mxu3 %v3012_v53  ;;  %v4133_v19 = vld [vmem:[#allocation5 + $0x7c4] sm:$0xf]  ;;  %v3601_v20 = vld [vmem:[#allocation5 + $0x7d0] sm:$0xf0]  ;;  %v3476_v23 = vor.u32 %v4101_v15, %v3473_v16 }
  0x76   :  { %v4033_v24 = vld [vmem:[#allocation5 + $0x4a4] sm:$0xf]  ;;  %v3201_v25 = vld [vmem:[#allocation5 + $0x4b0] sm:$0xf0]  ;;  %v3604_v27 = vor.u32 %v4133_v19, %v3601_v20 }
  0x77   :  { %1760 = vmatpush.bf16.msra.mxu0 %v2612_v60  ;;  %1773 = vmatpush.bf16.msra.mxu1 %v2740_v1  ;;  %v4065_v26 = vld [vmem:[#allocation5 + $0x5a4] sm:$0xf]  ;;  %v3329_v28 = vld [vmem:[#allocation5 + $0x5b0] sm:$0xf0]  ;;  %v3204_v33 = vor.u32 %v4033_v24, %v3201_v25 }
  0x78   :  { %1786 = vmatpush.bf16.msra.mxu2 %v2868_v2  ;;  %v4097_v29 = vld [vmem:[#allocation5 + $0x6a4] sm:$0xf]  ;;  %v3457_v30 = vld [vmem:[#allocation5 + $0x6b0] sm:$0xf0]  ;;  %v3332_v34 = vor.u32 %v4065_v26, %v3329_v28 }
  0x79   :  { %1799 = vmatpush.bf16.msra.mxu3 %v2996_v5  ;;  %v4129_v31 = vld [vmem:[#allocation5 + $0x7a4] sm:$0xf]  ;;  %v3585_v32 = vld [vmem:[#allocation5 + $0x7b0] sm:$0xf0]  ;;  %v3460_v36 = vor.u32 %v4097_v29, %v3457_v30 }
  0x7a   :  { %1761 = vmatmul.bf16.vlgmr.msra.gmra.mxu0 %v4387_v10  ;;  %1774 = vmatmul.bf16.vlgmr.msra.gmra.mxu1 %v4391_v18  ;;  %v4029_v37 = vld [vmem:[#allocation5 + $0x484] sm:$0xf]  ;;  %v3185_v40 = vld [vmem:[#allocation5 + $0x490] sm:$0xf0]  ;;  %v3588_v43 = vor.u32 %v4129_v31, %v3585_v32 }
  0x7b   :  { %1805 = vmatpush.bf16.msrb.mxu0 %v3236_v6  ;;  %1818 = vmatpush.bf16.msrb.mxu1 %v3364_v7  ;;  %v4061_v42 = vld [vmem:[#allocation5 + $0x584] sm:$0xf]  ;;  %v3313_v44 = vld [vmem:[#allocation5 + $0x590] sm:$0xf0]  ;;  %v3188_v49 = vor.u32 %v4029_v37, %v3185_v40  ;;  %v2727_v40 = vld [vmem:[#allocation5 + $0xe8] sm:$0xf] }
  0x7c   :  { %1831 = vmatpush.bf16.msrb.mxu2 %v3492_v8  ;;  %1800 = vmatmul.bf16.vlgmr.msra.gmra.mxu3 %v4389_v17  ;;  %v4093_v45 = vld [vmem:[#allocation5 + $0x684] sm:$0xf]  ;;  %v3441_v46 = vld [vmem:[#allocation5 + $0x690] sm:$0xf0]  ;;  %v3316_v50 = vor.u32 %v4061_v42, %v3313_v44  ;;  %v3916_v42 = vld [vmem:[#allocation5 + $0xf4] sm:$0xf0] }
  0x7d   :  { %1844 = vmatpush.bf16.msrb.mxu3 %v3620_v13  ;;  %1787 = vmatmul.bf16.vlgmr.msra.gmra.mxu2 %v4384_v0  ;;  %v4125_v47 = vld [vmem:[#allocation5 + $0x784] sm:$0xf]  ;;  %v3569_v48 = vld [vmem:[#allocation5 + $0x790] sm:$0xf0]  ;;  %v3444_v51 = vor.u32 %v4093_v45, %v3441_v46  ;;  %v3948_v45 = vld [vmem:[#allocation5 + $0x1f4] sm:$0xf0] }
  0x7e   :  { %v4025_v52 = vld [vmem:[#allocation5 + $0x464] sm:$0xf]  ;;  %v3169_v53 = vld [vmem:[#allocation5 + $0x470] sm:$0xf0]  ;;  %v3572_v55 = vor.u32 %v4125_v47, %v3569_v48  ;;  %v2983_v46 = vld [vmem:[#allocation5 + $0x2e8] sm:$0xf] }
  0x7f   :  { %1806 = vmatpush.bf16.msrb.mxu0 %v3220_v21  ;;  %1819 = vmatpush.bf16.msrb.mxu1 %v3348_v22  ;;  %v4057_v54 = vld [vmem:[#allocation5 + $0x564] sm:$0xf]  ;;  %v3297_v56 = vld [vmem:[#allocation5 + $0x570] sm:$0xf0]  ;;  %v3172_v61 = vor.u32 %v4025_v52, %v3169_v53  ;;  %v3980_v47 = vld [vmem:[#allocation5 + $0x2f4] sm:$0xf0]  ;;  %v2728_v53 = vor.u32 %v3916_v42, %v2727_v40 }
  0x80   :  { %1832 = vmatpush.bf16.msrb.mxu2 %v3476_v23  ;;  %v4089_v57 = vld [vmem:[#allocation5 + $0x664] sm:$0xf]  ;;  %v3425_v58 = vld [vmem:[#allocation5 + $0x670] sm:$0xf0]  ;;  %v3300_v62 = vor.u32 %v4057_v54, %v3297_v56  ;;  %v2711_v56 = vld [vmem:[#allocation5 + $0xc8] sm:$0xf] }
  0x81   :  { %1845 = vmatpush.bf16.msrb.mxu3 %v3604_v27  ;;  %v4121_v59 = vld [vmem:[#allocation5 + $0x764] sm:$0xf]  ;;  %v3553_v60 = vld [vmem:[#allocation5 + $0x770] sm:$0xf0]  ;;  %v3428_v63 = vor.u32 %v4089_v57, %v3425_v58  ;;  %v3912_v57 = vld [vmem:[#allocation5 + $0xd4] sm:$0xf0] }
  0x82   :  { %v4021_v1 = vld [vmem:[#allocation5 + $0x444] sm:$0xf]  ;;  %v3153_v2 = vld [vmem:[#allocation5 + $0x450] sm:$0xf0]  ;;  %v3556_v4 = vor.u32 %v4121_v59, %v3553_v60  ;;  %v2839_v58 = vld [vmem:[#allocation5 + $0x1c8] sm:$0xf] }
  0x83   :  { %1807 = vmatpush.bf16.msrb.mxu0 %v3204_v33  ;;  %1820 = vmatpush.bf16.msrb.mxu1 %v3332_v34  ;;  %v4053_v3 = vld [vmem:[#allocation5 + $0x544] sm:$0xf]  ;;  %v3281_v5 = vld [vmem:[#allocation5 + $0x550] sm:$0xf0]  ;;  %v3156_v11 = vor.u32 %v4021_v1, %v3153_v2  ;;  %v3944_v60 = vld [vmem:[#allocation5 + $0x1d4] sm:$0xf0]  ;;  %v2712_v2 = vor.u32 %v3912_v57, %v2711_v56 }
  0x84   :  { %1833 = vmatpush.bf16.msrb.mxu2 %v3460_v36  ;;  %v4085_v6 = vld [vmem:[#allocation5 + $0x644] sm:$0xf]  ;;  %v3409_v7 = vld [vmem:[#allocation5 + $0x650] sm:$0xf0]  ;;  %v3284_v12 = vor.u32 %v4053_v3, %v3281_v5  ;;  %v4008_v1 = vld [vmem:[#allocation5 + $0x3d4] sm:$0xf0]  ;;  %v2840_v3 = vor.u32 %v3944_v60, %v2839_v58 }
  0x85   :  { %1846 = vmatpush.bf16.msrb.mxu3 %v3588_v43  ;;  %v4117_v8 = vld [vmem:[#allocation5 + $0x744] sm:$0xf]  ;;  %v3537_v9 = vld [vmem:[#allocation5 + $0x750] sm:$0xf0]  ;;  %v3412_v13 = vor.u32 %v4085_v6, %v3409_v7  ;;  %v2855_v43 = vld [vmem:[#allocation5 + $0x1e8] sm:$0xf] }
  0x86   :  { %v4017_v14 = vld [vmem:[#allocation5 + $0x424] sm:$0xf]  ;;  %v3137_v15 = vld [vmem:[#allocation5 + $0x430] sm:$0xf0]  ;;  %v3540_v19 = vor.u32 %v4117_v8, %v3537_v9  ;;  %v2856_v54 = vor.u32 %v3948_v45, %v2855_v43  ;;  %v2695_v5 = vld [vmem:[#allocation5 + $0xa8] sm:$0xf] }
  0x87   :  { %1808 = vmatpush.bf16.msrb.mxu0 %v3188_v49  ;;  %1821 = vmatpush.bf16.msrb.mxu1 %v3316_v50  ;;  %v4049_v16 = vld [vmem:[#allocation5 + $0x524] sm:$0xf]  ;;  %v3265_v20 = vld [vmem:[#allocation5 + $0x530] sm:$0xf0]  ;;  %v3140_v25 = vor.u32 %v4017_v14, %v3137_v15  ;;  %v3111_v50 = vld [vmem:[#allocation5 + $0x3e8] sm:$0xf] }
  0x88   :  { %1834 = vmatpush.bf16.msrb.mxu2 %v3444_v51  ;;  %v4081_v21 = vld [vmem:[#allocation5 + $0x624] sm:$0xf]  ;;  %v3393_v22 = vld [vmem:[#allocation5 + $0x630] sm:$0xf0]  ;;  %v3268_v28 = vor.u32 %v4049_v16, %v3265_v20  ;;  %v4012_v51 = vld [vmem:[#allocation5 + $0x3f4] sm:$0xf0] }
  0x89   :  { %1847 = vmatpush.bf16.msrb.mxu3 %v3572_v55  ;;  %v4113_v23 = vld [vmem:[#allocation5 + $0x724] sm:$0xf]  ;;  %v3521_v24 = vld [vmem:[#allocation5 + $0x730] sm:$0xf0]  ;;  %v3396_v29 = vor.u32 %v4081_v21, %v3393_v22  ;;  %v2984_v55 = vor.u32 %v3980_v47, %v2983_v46  ;;  %v3112_v59 = vor.u32 %v4012_v51, %v3111_v50  ;;  %v3908_v6 = vld [vmem:[#allocation5 + $0xb4] sm:$0xf0] }
  0x8a   :  { %v4013_v26 = vld [vmem:[#allocation5 + $0x404] sm:$0xf]  ;;  %v3121_v27 = vld [vmem:[#allocation5 + $0x410] sm:$0xf0]  ;;  %v3524_v33 = vor.u32 %v4113_v23, %v3521_v24  ;;  %v2823_v7 = vld [vmem:[#allocation5 + $0x1a8] sm:$0xf]  ;;  %v2696_v15 = vor.u32 %v3908_v6, %v2695_v5 }
  0x8b   :  { %1809 = vmatpush.bf16.msrb.mxu0 %v3172_v61  ;;  %1822 = vmatpush.bf16.msrb.mxu1 %v3300_v62  ;;  %v4045_v30 = vld [vmem:[#allocation5 + $0x504] sm:$0xf]  ;;  %v3249_v31 = vld [vmem:[#allocation5 + $0x510] sm:$0xf0]  ;;  %v3124_v44 = vor.u32 %v4013_v26, %v3121_v27  ;;  %v2967_v61 = vld [vmem:[#allocation5 + $0x2c8] sm:$0xf] }
  0x8c   :  { %1835 = vmatpush.bf16.msrb.mxu2 %v3428_v63  ;;  %v4077_v32 = vld [vmem:[#allocation5 + $0x604] sm:$0xf]  ;;  %v3377_v34 = vld [vmem:[#allocation5 + $0x610] sm:$0xf0]  ;;  %v3252_v48 = vor.u32 %v4045_v30, %v3249_v31  ;;  %v3976_v62 = vld [vmem:[#allocation5 + $0x2d4] sm:$0xf0] }
  0x8d   :  { %1848 = vmatpush.bf16.msrb.mxu3 %v3556_v4  ;;  %v4109_v36 = vld [vmem:[#allocation5 + $0x704] sm:$0xf]  ;;  %v3505_v37 = vld [vmem:[#allocation5 + $0x710] sm:$0xf0]  ;;  %v3380_v49 = vor.u32 %v4077_v32, %v3377_v34  ;;  %v3095_v63 = vld [vmem:[#allocation5 + $0x3c8] sm:$0xf]  ;;  %v2968_v4 = vor.u32 %v3976_v62, %v2967_v61 }
  0x8e   :  { %v3508_v52 = vor.u32 %v4109_v36, %v3505_v37  ;;  %v3096_v8 = vor.u32 %v4008_v1, %v3095_v63  ;;  %v3940_v9 = vld [vmem:[#allocation5 + $0x1b4] sm:$0xf0]  ;;  %v2679_v20 = vld [vmem:[#allocation5 + $0x88] sm:$0xf] }
  0x8f   :  { %1810 = vmatpush.bf16.msrb.mxu0 %v3156_v11  ;;  %1823 = vmatpush.bf16.msrb.mxu1 %v3284_v12  ;;  %v2951_v11 = vld [vmem:[#allocation5 + $0x2a8] sm:$0xf]  ;;  %v3972_v12 = vld [vmem:[#allocation5 + $0x2b4] sm:$0xf0]  ;;  %v2824_v16 = vor.u32 %v3940_v9, %v2823_v7 }
  0x90   :  { %1836 = vmatpush.bf16.msrb.mxu2 %v3412_v13  ;;  %v3079_v13 = vld [vmem:[#allocation5 + $0x3a8] sm:$0xf]  ;;  %v4004_v14 = vld [vmem:[#allocation5 + $0x3b4] sm:$0xf0] }
  0x91   :  { %1849 = vmatpush.bf16.msrb.mxu3 %v3540_v19  ;;  %v2952_v19 = vor.u32 %v3972_v12, %v2951_v11  ;;  %v3904_v21 = vld [vmem:[#allocation5 + $0x94] sm:$0xf0]  ;;  %v2807_v22 = vld [vmem:[#allocation5 + $0x188] sm:$0xf]  ;;  %v3080_v23 = vor.u32 %v4004_v14, %v3079_v13 }
  0x92   :  { %v3936_v24 = vld [vmem:[#allocation5 + $0x194] sm:$0xf0]  ;;  %v3063_v27 = vld [vmem:[#allocation5 + $0x388] sm:$0xf] }
  0x93   :  { %1811 = vmatpush.bf16.msrb.mxu0 %v3140_v25  ;;  %1824 = vmatpush.bf16.msrb.mxu1 %v3268_v28  ;;  %v2935_v25 = vld [vmem:[#allocation5 + $0x288] sm:$0xf]  ;;  %v3968_v26 = vld [vmem:[#allocation5 + $0x294] sm:$0xf0]  ;;  %v2808_v30 = vor.u32 %v3936_v24, %v2807_v22 }
  0x94   :  { %1837 = vmatpush.bf16.msrb.mxu2 %v3396_v29  ;;  %v4000_v28 = vld [vmem:[#allocation5 + $0x394] sm:$0xf0]  ;;  %v2680_v29 = vor.u32 %v3904_v21, %v2679_v20  ;;  %v2936_v31 = vor.u32 %v3968_v26, %v2935_v25  ;;  %v2663_v32 = vld [vmem:[#allocation5 + $0x68] sm:$0xf] }
  0x95   :  { %1850 = vmatpush.bf16.msrb.mxu3 %v3524_v33  ;;  %v3900_v33 = vld [vmem:[#allocation5 + $0x74] sm:$0xf0]  ;;  %v2791_v34 = vld [vmem:[#allocation5 + $0x168] sm:$0xf]  ;;  %v3064_v36 = vor.u32 %v4000_v28, %v3063_v27 }
  0x96   :  { %v3932_v37 = vld [vmem:[#allocation5 + $0x174] sm:$0xf0]  ;;  %v2919_v40 = vld [vmem:[#allocation5 + $0x268] sm:$0xf]  ;;  %v2664_v45 = vor.u32 %v3900_v33, %v2663_v32 }
  0x97   :  { %1812 = vmatpush.bf16.msrb.mxu0 %v3124_v44  ;;  %1825 = vmatpush.bf16.msrb.mxu1 %v3252_v48  ;;  %v3964_v42 = vld [vmem:[#allocation5 + $0x274] sm:$0xf0]  ;;  %v3047_v43 = vld [vmem:[#allocation5 + $0x368] sm:$0xf]  ;;  %v2792_v46 = vor.u32 %v3932_v37, %v2791_v34 }
  0x98   :  { %1838 = vmatpush.bf16.msrb.mxu2 %v3380_v49  ;;  %v3996_v44 = vld [vmem:[#allocation5 + $0x374] sm:$0xf0]  ;;  %v2920_v47 = vor.u32 %v3964_v42, %v2919_v40  ;;  %v2647_v48 = vld [vmem:[#allocation5 + $0x48] sm:$0xf] }
  0x99   :  { %1851 = vmatpush.bf16.msrb.mxu3 %v3508_v52  ;;  %v3896_v49 = vld [vmem:[#allocation5 + $0x54] sm:$0xf0]  ;;  %v2775_v50 = vld [vmem:[#allocation5 + $0x148] sm:$0xf]  ;;  %v3048_v51 = vor.u32 %v3996_v44, %v3047_v43 }
  0x9a   :  { %1813 = vmatmul.bf16.vlgmr.msrb.gmra.mxu0 %v4398_v38  ;;  %1826 = vmatmul.bf16.vlgmr.msrb.gmra.mxu1 %v4402_v41  ;;  %v3928_v52 = vld [vmem:[#allocation5 + $0x154] sm:$0xf0]  ;;  %v2648_v57 = vor.u32 %v3896_v49, %v2647_v48  ;;  %v2631_v60 = vld [vmem:[#allocation5 + $0x28] sm:$0xf] }
  0x9b   :  { %1857 = vmatpush.bf16.msra.mxu0 %v2728_v53  ;;  %1870 = vmatpush.bf16.msra.mxu1 %v2856_v54  ;;  %v2903_v53 = vld [vmem:[#allocation5 + $0x248] sm:$0xf]  ;;  %v3960_v54 = vld [vmem:[#allocation5 + $0x254] sm:$0xf0]  ;;  %v2776_v58 = vor.u32 %v3928_v52, %v2775_v50 }
  0x9c   :  { %1883 = vmatpush.bf16.msra.mxu2 %v2984_v55  ;;  %1852 = vmatmul.bf16.vlgmr.msrb.gmra.mxu3 %v4400_v39  ;;  %v3031_v55 = vld [vmem:[#allocation5 + $0x348] sm:$0xf]  ;;  %v3992_v56 = vld [vmem:[#allocation5 + $0x354] sm:$0xf0] }
  0x9d   :  { %1896 = vmatpush.bf16.msra.mxu3 %v3112_v59  ;;  %1839 = vmatmul.bf16.vlgmr.msrb.gmra.mxu2 %v4396_v35  ;;  %v2904_v59 = vor.u32 %v3960_v54, %v2903_v53  ;;  %v3892_v61 = vld [vmem:[#allocation5 + $0x34] sm:$0xf0]  ;;  %v2759_v62 = vld [vmem:[#allocation5 + $0x128] sm:$0xf]  ;;  %v3032_v63 = vor.u32 %v3992_v56, %v3031_v55 }
  0x9e   :  { %v3924_v1 = vld [vmem:[#allocation5 + $0x134] sm:$0xf0]  ;;  %v2632_v6 = vor.u32 %v3892_v61, %v2631_v60  ;;  %v2615_v7 = vld [vmem:[#allocation5 + $0x8] sm:$0xf] }
  0x9f   :  { %1858 = vmatpush.bf16.msra.mxu0 %v2712_v2  ;;  %1871 = vmatpush.bf16.msra.mxu1 %v2840_v3  ;;  %v2887_v2 = vld [vmem:[#allocation5 + $0x228] sm:$0xf]  ;;  %v3956_v3 = vld [vmem:[#allocation5 + $0x234] sm:$0xf0]  ;;  %v2760_v9 = vor.u32 %v3924_v1, %v2759_v62 }
  0xa0   :  { %1884 = vmatpush.bf16.msra.mxu2 %v2968_v4  ;;  %v3015_v4 = vld [vmem:[#allocation5 + $0x328] sm:$0xf]  ;;  %v3988_v5 = vld [vmem:[#allocation5 + $0x334] sm:$0xf0]  ;;  %v2888_v11 = vor.u32 %v3956_v3, %v2887_v2 }
  0xa1   :  { %1897 = vmatpush.bf16.msra.mxu3 %v3096_v8  ;;  %v3888_v8 = vld [vmem:[#allocation5 + $0x14] sm:$0xf0]  ;;  %v2743_v12 = vld [vmem:[#allocation5 + $0x108] sm:$0xf] }
  0xa2   :  { %v3920_v13 = vld [vmem:[#allocation5 + $0x114] sm:$0xf0]  ;;  %v2871_v14 = vld [vmem:[#allocation5 + $0x208] sm:$0xf]  ;;  %v2616_v24 = vor.u32 %v3888_v8, %v2615_v7  ;;  %v4420_v8 = vld [vmem:[#allocation7] sm:$0xf] }
  0xa3   :  { %1859 = vmatpush.bf16.msra.mxu0 %v2696_v15  ;;  %1872 = vmatpush.bf16.msra.mxu1 %v2824_v16  ;;  %v3016_v15 = vor.u32 %v3988_v5, %v3015_v4  ;;  %v3952_v16 = vld [vmem:[#allocation5 + $0x214] sm:$0xf0]  ;;  %v3239_v21 = vld [vmem:[#allocation5 + $0x4e8] sm:$0xf]  ;;  %v2744_v28 = vor.u32 %v3920_v13, %v2743_v12 }
  0xa4   :  { %1885 = vmatpush.bf16.msra.mxu2 %v2952_v19  ;;  %v2999_v19 = vld [vmem:[#allocation5 + $0x308] sm:$0xf]  ;;  %v3984_v20 = vld [vmem:[#allocation5 + $0x314] sm:$0xf0] }
  0xa5   :  { %1898 = vmatpush.bf16.msra.mxu3 %v3080_v23  ;;  %v4044_v22 = vld [vmem:[#allocation5 + $0x4f4] sm:$0xf0]  ;;  %v3367_v23 = vld [vmem:[#allocation5 + $0x5e8] sm:$0xf]  ;;  %v3000_v32 = vor.u32 %v3984_v20, %v2999_v19  ;;  %v361_v20 = vperm.slane %v4420_v8, 0 }
  0xa6   :  { %v4076_v25 = vld [vmem:[#allocation5 + $0x5f4] sm:$0xf0]  ;;  %v3495_v26 = vld [vmem:[#allocation5 + $0x6e8] sm:$0xf]  ;;  %v3240_v33 = vor.u32 %v4044_v22, %v3239_v21 }
  0xa7   :  { %1860 = vmatpush.bf16.msra.mxu0 %v2680_v29  ;;  %1873 = vmatpush.bf16.msra.mxu1 %v2808_v30  ;;  %v4108_v27 = vld [vmem:[#allocation5 + $0x6f4] sm:$0xf0]  ;;  %v2872_v29 = vor.u32 %v3952_v16, %v2871_v14  ;;  %v3623_v30 = vld [vmem:[#allocation5 + $0x7e8] sm:$0xf]  ;;  %v3368_v34 = vor.u32 %v4076_v25, %v3367_v23 }
  0xa8   :  { %1886 = vmatpush.bf16.msra.mxu2 %v2936_v31  ;;  %v4140_v31 = vld [vmem:[#allocation5 + $0x7f4] sm:$0xf0]  ;;  %v3223_v37 = vld [vmem:[#allocation5 + $0x4c8] sm:$0xf] }
  0xa9   :  { %1899 = vmatpush.bf16.msra.mxu3 %v3064_v36  ;;  %v3496_v36 = vor.u32 %v4108_v27, %v3495_v26  ;;  %v4040_v40 = vld [vmem:[#allocation5 + $0x4d4] sm:$0xf0]  ;;  %v3351_v42 = vld [vmem:[#allocation5 + $0x5c8] sm:$0xf]  ;;  %v3624_v43 = vor.u32 %v4140_v31, %v3623_v30 }
  0xaa   :  { %v4072_v44 = vld [vmem:[#allocation5 + $0x5d4] sm:$0xf0]  ;;  %v3224_v49 = vor.u32 %v4040_v40, %v3223_v37  ;;  %v3207_v52 = vld [vmem:[#allocation5 + $0x4a8] sm:$0xf] }
  0xab   :  { %1861 = vmatpush.bf16.msra.mxu0 %v2664_v45  ;;  %1874 = vmatpush.bf16.msra.mxu1 %v2792_v46  ;;  %v3479_v45 = vld [vmem:[#allocation5 + $0x6c8] sm:$0xf]  ;;  %v4104_v46 = vld [vmem:[#allocation5 + $0x6d4] sm:$0xf0]  ;;  %v3352_v50 = vor.u32 %v4072_v44, %v3351_v42 }
  0xac   :  { %1887 = vmatpush.bf16.msra.mxu2 %v2920_v47  ;;  %v3607_v47 = vld [vmem:[#allocation5 + $0x7c8] sm:$0xf]  ;;  %v4136_v48 = vld [vmem:[#allocation5 + $0x7d4] sm:$0xf0] }
  0xad   :  { %1900 = vmatpush.bf16.msra.mxu3 %v3048_v51  ;;  %v3480_v51 = vor.u32 %v4104_v46, %v3479_v45  ;;  %v4036_v53 = vld [vmem:[#allocation5 + $0x4b4] sm:$0xf0]  ;;  %v3335_v54 = vld [vmem:[#allocation5 + $0x5a8] sm:$0xf]  ;;  %v3608_v55 = vor.u32 %v4136_v48, %v3607_v47 }
  0xae   :  { %v4068_v56 = vld [vmem:[#allocation5 + $0x5b4] sm:$0xf0]  ;;  %v3208_v61 = vor.u32 %v4036_v53, %v3207_v52  ;;  %v3191_v62 = vld [vmem:[#allocation5 + $0x488] sm:$0xf] }
  0xaf   :  { %1862 = vmatpush.bf16.msra.mxu0 %v2648_v57  ;;  %1875 = vmatpush.bf16.msra.mxu1 %v2776_v58  ;;  %v3463_v57 = vld [vmem:[#allocation5 + $0x6a8] sm:$0xf]  ;;  %v4100_v58 = vld [vmem:[#allocation5 + $0x6b4] sm:$0xf0] }
  0xb0   :  { %1888 = vmatpush.bf16.msra.mxu2 %v2904_v59  ;;  %v3591_v59 = vld [vmem:[#allocation5 + $0x7a8] sm:$0xf]  ;;  %v4132_v60 = vld [vmem:[#allocation5 + $0x7b4] sm:$0xf0]  ;;  %v3464_v1 = vor.u32 %v4100_v58, %v3463_v57 }
  0xb1   :  { %1901 = vmatpush.bf16.msra.mxu3 %v3032_v63  ;;  %v3336_v63 = vor.u32 %v4068_v56, %v3335_v54  ;;  %v4032_v2 = vld [vmem:[#allocation5 + $0x494] sm:$0xf0]  ;;  %v3319_v3 = vld [vmem:[#allocation5 + $0x588] sm:$0xf]  ;;  %v3592_v5 = vor.u32 %v4132_v60, %v3591_v59 }
  0xb2   :  { %v4064_v4 = vld [vmem:[#allocation5 + $0x594] sm:$0xf0]  ;;  %v3192_v12 = vor.u32 %v4032_v2, %v3191_v62  ;;  %v3175_v13 = vld [vmem:[#allocation5 + $0x468] sm:$0xf] }
  0xb3   :  { %1863 = vmatpush.bf16.msra.mxu0 %v2632_v6  ;;  %1876 = vmatpush.bf16.msra.mxu1 %v2760_v9  ;;  %v3447_v6 = vld [vmem:[#allocation5 + $0x688] sm:$0xf]  ;;  %v4096_v7 = vld [vmem:[#allocation5 + $0x694] sm:$0xf0]  ;;  %v3320_v14 = vor.u32 %v4064_v4, %v3319_v3 }
  0xb4   :  { %1889 = vmatpush.bf16.msra.mxu2 %v2888_v11  ;;  %v3575_v9 = vld [vmem:[#allocation5 + $0x788] sm:$0xf]  ;;  %v4128_v11 = vld [vmem:[#allocation5 + $0x794] sm:$0xf0] }
  0xb5   :  { %1902 = vmatpush.bf16.msra.mxu3 %v3016_v15  ;;  %v3448_v15 = vor.u32 %v4096_v7, %v3447_v6  ;;  %v4028_v16 = vld [vmem:[#allocation5 + $0x474] sm:$0xf0]  ;;  %v3303_v19 = vld [vmem:[#allocation5 + $0x568] sm:$0xf]  ;;  %v3576_v21 = vor.u32 %v4128_v11, %v3575_v9 }
  0xb6   :  { %v4060_v22 = vld [vmem:[#allocation5 + $0x574] sm:$0xf0]  ;;  %v3431_v23 = vld [vmem:[#allocation5 + $0x668] sm:$0xf]  ;;  %v3176_v27 = vor.u32 %v4028_v16, %v3175_v13  ;;  %v1671_v45 = vpop.f32.mrf.mxu1  ;;  %v2729_v16 = vld [vmem:[#allocation5 + $0xf8] sm:$0xf0] }
  0xb7   :  { %1864 = vmatpush.bf16.msra.mxu0 %v2616_v24  ;;  %1877 = vmatpush.bf16.msra.mxu1 %v2744_v28  ;;  %v4092_v24 = vld [vmem:[#allocation5 + $0x674] sm:$0xf0]  ;;  %v3559_v25 = vld [vmem:[#allocation5 + $0x768] sm:$0xf] }
  0xb8   :  { %1890 = vmatpush.bf16.msra.mxu2 %v2872_v29  ;;  %v4124_v26 = vld [vmem:[#allocation5 + $0x774] sm:$0xf0]  ;;  %v3304_v29 = vor.u32 %v4060_v22, %v3303_v19  ;;  %v3432_v30 = vor.u32 %v4092_v24, %v3431_v23  ;;  %v3159_v31 = vld [vmem:[#allocation5 + $0x448] sm:$0xf]  ;;  %v3946_v19 = vld [vmem:[#allocation5 + $0x1ec] sm:$0xf] }
  0xb9   :  { %1903 = vmatpush.bf16.msra.mxu3 %v3000_v32  ;;  %v4024_v32 = vld [vmem:[#allocation5 + $0x454] sm:$0xf0]  ;;  %v3415_v40 = vld [vmem:[#allocation5 + $0x648] sm:$0xf]  ;;  %v2857_v23 = vld [vmem:[#allocation5 + $0x1f8] sm:$0xf0] }
  0xba   :  { %1865 = vmatmul.bf16.vlgmr.msra.gmra.mxu0 %v4387_v10  ;;  %1878 = vmatmul.bf16.vlgmr.msra.gmra.mxu1 %v4391_v18  ;;  %v4056_v37 = vld [vmem:[#allocation5 + $0x554] sm:$0xf0]  ;;  %v3160_v47 = vor.u32 %v4024_v32, %v3159_v31  ;;  %v3271_v53 = vld [vmem:[#allocation5 + $0x528] sm:$0xf]  ;;  %v3978_v24 = vld [vmem:[#allocation5 + $0x2ec] sm:$0xf]  ;;  %v2860_v32 = vor.u32 %v3946_v19, %v2857_v23 }
  0xbb   :  { %1909 = vmatpush.bf16.msrb.mxu0 %v3240_v33  ;;  %1922 = vmatpush.bf16.msrb.mxu1 %v3368_v34  ;;  %v3287_v33 = vld [vmem:[#allocation5 + $0x548] sm:$0xf]  ;;  %v4088_v42 = vld [vmem:[#allocation5 + $0x654] sm:$0xf0]  ;;  %v2665_v19 = vld [vmem:[#allocation5 + $0x78] sm:$0xf0] }
  0xbc   :  { %1935 = vmatpush.bf16.msrb.mxu2 %v3496_v36  ;;  %1904 = vmatmul.bf16.vlgmr.msra.gmra.mxu3 %v4389_v17  ;;  %v3560_v36 = vor.u32 %v4124_v26, %v3559_v25  ;;  %v4120_v44 = vld [vmem:[#allocation5 + $0x754] sm:$0xf0]  ;;  %v3399_v56 = vld [vmem:[#allocation5 + $0x628] sm:$0xf]  ;;  %v2985_v25 = vld [vmem:[#allocation5 + $0x2f8] sm:$0xf0] }
  0xbd   :  { %1948 = vmatpush.bf16.msrb.mxu3 %v3624_v43  ;;  %1891 = vmatmul.bf16.vlgmr.msra.gmra.mxu2 %v4384_v0  ;;  %v3543_v43 = vld [vmem:[#allocation5 + $0x748] sm:$0xf]  ;;  %v4020_v52 = vld [vmem:[#allocation5 + $0x434] sm:$0xf0] }
  0xbe   :  { %v3544_v54 = vor.u32 %v4120_v44, %v3543_v43  ;;  %v4084_v57 = vld [vmem:[#allocation5 + $0x634] sm:$0xf0]  ;;  %v3527_v59 = vld [vmem:[#allocation5 + $0x728] sm:$0xf]  ;;  %v2841_v43 = vld [vmem:[#allocation5 + $0x1d8] sm:$0xf0] }
  0xbf   :  { %1910 = vmatpush.bf16.msrb.mxu0 %v3224_v49  ;;  %1923 = vmatpush.bf16.msrb.mxu1 %v3352_v50  ;;  %v3288_v49 = vor.u32 %v4056_v37, %v3287_v33  ;;  %v3416_v50 = vor.u32 %v4088_v42, %v3415_v40  ;;  %v4116_v60 = vld [vmem:[#allocation5 + $0x734] sm:$0xf0]  ;;  %v3255_v6 = vld [vmem:[#allocation5 + $0x508] sm:$0xf]  ;;  %v2988_v33 = vor.u32 %v3978_v24, %v2985_v25  ;;  %v3942_v37 = vld [vmem:[#allocation5 + $0x1cc] sm:$0xf] }
  0xc0   :  { %1936 = vmatpush.bf16.msrb.mxu2 %v3480_v51  ;;  %v3143_v51 = vld [vmem:[#allocation5 + $0x428] sm:$0xf]  ;;  %v4048_v7 = vld [vmem:[#allocation5 + $0x514] sm:$0xf0]  ;;  %v3528_v11 = vor.u32 %v4116_v60, %v3527_v59  ;;  %v3974_v44 = vld [vmem:[#allocation5 + $0x2cc] sm:$0xf] }
  0xc1   :  { %1949 = vmatpush.bf16.msrb.mxu3 %v3608_v55  ;;  %v4052_v55 = vld [vmem:[#allocation5 + $0x534] sm:$0xf0]  ;;  %v3144_v62 = vor.u32 %v4020_v52, %v3143_v51  ;;  %v3383_v9 = vld [vmem:[#allocation5 + $0x608] sm:$0xf]  ;;  %v3256_v26 = vor.u32 %v4048_v7, %v3255_v6  ;;  %v3906_v51 = vld [vmem:[#allocation5 + $0xac] sm:$0xf] }
  0xc2   :  { %v3272_v4 = vor.u32 %v4052_v55, %v3271_v53  ;;  %v3511_v13 = vld [vmem:[#allocation5 + $0x708] sm:$0xf]  ;;  %v2697_v52 = vld [vmem:[#allocation5 + $0xb8] sm:$0xf0]  ;;  %v3938_v53 = vld [vmem:[#allocation5 + $0x1ac] sm:$0xf] }
  0xc3   :  { %1911 = vmatpush.bf16.msrb.mxu0 %v3208_v61  ;;  %1924 = vmatpush.bf16.msrb.mxu1 %v3336_v63  ;;  %v1658_v28 = vpop.f32.mrf.mxu0  ;;  %v1697_v61 = vpop.f32.mrf.mxu3  ;;  %v3127_v63 = vld [vmem:[#allocation5 + $0x408] sm:$0xf]  ;;  %v2825_v55 = vld [vmem:[#allocation5 + $0x1b8] sm:$0xf0]  ;;  %v2700_v60 = vor.u32 %v3906_v51, %v2697_v52  ;;  %v3966_v6 = vld [vmem:[#allocation5 + $0x28c] sm:$0xf] }
  0xc4   :  { %1937 = vmatpush.bf16.msrb.mxu2 %v3464_v1  ;;  %v1659_v34 = vadd.f32 %v1658_v28, %v361_v20  ;;  %v4016_v1 = vld [vmem:[#allocation5 + $0x414] sm:$0xf0]  ;;  %v1673_v20 = vpop.f32.mrf.mxu1  ;;  %v4010_v28 = vld [vmem:[#allocation5 + $0x3ec] sm:$0xf]  ;;  %v3081_v59 = vld [vmem:[#allocation5 + $0x3b8] sm:$0xf0] }
  0xc5   :  { %1950 = vmatpush.bf16.msrb.mxu3 %v3592_v5  ;;  %v1684_v46 = vpop.f32.mrf.mxu2  ;;  %v3400_v5 = vor.u32 %v4084_v57, %v3399_v56  ;;  %v3128_v22 = vor.u32 %v4016_v1, %v3127_v63  ;;  %v3970_v56 = vld [vmem:[#allocation5 + $0x2ac] sm:$0xf]  ;;  %v2953_v57 = vld [vmem:[#allocation5 + $0x2b8] sm:$0xf0] }
  0xc6   :  { %v1672_v48 = vadd.f32 %v1671_v45, %v1659_v34  ;;  %v3910_v34 = vld [vmem:[#allocation5 + $0xcc] sm:$0xf]  ;;  %v2969_v45 = vld [vmem:[#allocation5 + $0x2d8] sm:$0xf0] }
  0xc7   :  { %1912 = vmatpush.bf16.msrb.mxu0 %v3192_v12  ;;  %1925 = vmatpush.bf16.msrb.mxu1 %v3320_v14  ;;  %v4080_v12 = vld [vmem:[#allocation5 + $0x614] sm:$0xf0]  ;;  %v3902_v63 = vld [vmem:[#allocation5 + $0x8c] sm:$0xf]  ;;  %v2681_v1 = vld [vmem:[#allocation5 + $0x98] sm:$0xf0] }
  0xc8   :  { %1938 = vmatpush.bf16.msrb.mxu2 %v3448_v15  ;;  %v1685_v58 = vadd.f32 %v1684_v46, %v1672_v48  ;;  %v4112_v14 = vld [vmem:[#allocation5 + $0x714] sm:$0xf0]  ;;  %v3914_v15 = vld [vmem:[#allocation5 + $0xec] sm:$0xf]  ;;  %v2937_v7 = vld [vmem:[#allocation5 + $0x298] sm:$0xf0] }
  0xc9   :  { %1951 = vmatpush.bf16.msrb.mxu3 %v3576_v21  ;;  %v2732_v31 = vor.u32 %v3914_v15, %v2729_v16  ;;  %v4006_v46 = vld [vmem:[#allocation5 + $0x3cc] sm:$0xf]  ;;  %v2940_v15 = vor.u32 %v3966_v6, %v2937_v7  ;;  %v2793_v24 = vld [vmem:[#allocation5 + $0x178] sm:$0xf0] }
  0xca   :  { %v4423_v2 = vadd.f32 %v1697_v61, %v1685_v58  ;;  %v4002_v58 = vld [vmem:[#allocation5 + $0x3ac] sm:$0xf]  ;;  %v2828_v61 = vor.u32 %v3938_v53, %v2825_v55  ;;  %v2745_v7 = vld [vmem:[#allocation5 + $0x118] sm:$0xf0] }
  0xcb   :  { %1913 = vmatpush.bf16.msrb.mxu0 %v3176_v27  ;;  %1926 = vmatpush.bf16.msrb.mxu1 %v3304_v29  ;;  %v1660_v3 = vpop.f32.mrf.mxu0  ;;  %v3384_v27 = vor.u32 %v4080_v12, %v3383_v9  ;;  %v3113_v29 = vld [vmem:[#allocation5 + $0x3f8] sm:$0xf0]  ;;  %v1699_v40 = vpop.f32.mrf.mxu3  ;;  %v3998_v9 = vld [vmem:[#allocation5 + $0x38c] sm:$0xf]  ;;  %v2684_v12 = vor.u32 %v3902_v63, %v2681_v1 }
  0xcc   :  { %1939 = vmatpush.bf16.msrb.mxu2 %v3432_v30  ;;  %v3512_v30 = vor.u32 %v4112_v14, %v3511_v13  ;;  %v3116_v42 = vor.u32 %v4010_v28, %v3113_v29  ;;  %v3934_v3 = vld [vmem:[#allocation5 + $0x18c] sm:$0xf]  ;;  %v3049_v28 = vld [vmem:[#allocation5 + $0x378] sm:$0xf0] }
  0xcd   :  { %1952 = vmatpush.bf16.msrb.mxu3 %v3560_v36  ;;  %v1686_v21 = vpop.f32.mrf.mxu2  ;;  %v2713_v36 = vld [vmem:[#allocation5 + $0xd8] sm:$0xf0]  ;;  %v3898_v16 = vld [vmem:[#allocation5 + $0x6c] sm:$0xf] }
  0xce   :  { %v2716_v48 = vor.u32 %v3910_v34, %v2713_v36  ;;  %v3930_v20 = vld [vmem:[#allocation5 + $0x16c] sm:$0xf]  ;;  %v2649_v34 = vld [vmem:[#allocation5 + $0x58] sm:$0xf0] }
  0xcf   :  { %1914 = vmatpush.bf16.msrb.mxu0 %v3160_v47  ;;  %1927 = vmatpush.bf16.msrb.mxu1 %v3288_v49  ;;  %v3097_v47 = vld [vmem:[#allocation5 + $0x3d8] sm:$0xf0]  ;;  %v2844_v49 = vor.u32 %v3942_v37, %v2841_v43  ;;  %v3962_v25 = vld [vmem:[#allocation5 + $0x26c] sm:$0xf] }
  0xd0   :  { %1940 = vmatpush.bf16.msrb.mxu2 %v3416_v50  ;;  %v2972_v50 = vor.u32 %v3974_v44, %v2969_v45  ;;  %v3926_v36 = vld [vmem:[#allocation5 + $0x14c] sm:$0xf]  ;;  %v2777_v40 = vld [vmem:[#allocation5 + $0x158] sm:$0xf0] }
  0xd1   :  { %1953 = vmatpush.bf16.msrb.mxu3 %v3544_v54  ;;  %v3100_v54 = vor.u32 %v4006_v46, %v3097_v47  ;;  %v2905_v43 = vld [vmem:[#allocation5 + $0x258] sm:$0xf0]  ;;  %v3990_v46 = vld [vmem:[#allocation5 + $0x34c] sm:$0xf]  ;;  %v2780_v51 = vor.u32 %v3926_v36, %v2777_v40 }
  0xd2   :  { %v3033_v47 = vld [vmem:[#allocation5 + $0x358] sm:$0xf0]  ;;  %v3890_v53 = vld [vmem:[#allocation5 + $0x2c] sm:$0xf] }
  0xd3   :  { %1915 = vmatpush.bf16.msrb.mxu0 %v3144_v62  ;;  %1928 = vmatpush.bf16.msrb.mxu1 %v3272_v4  ;;  %v2956_v62 = vor.u32 %v3970_v56, %v2953_v57  ;;  %v3084_v4 = vor.u32 %v4002_v58, %v3081_v59  ;;  %v3922_v55 = vld [vmem:[#allocation5 + $0x12c] sm:$0xf]  ;;  %v3036_v57 = vor.u32 %v3990_v46, %v3033_v47  ;;  %v2761_v58 = vld [vmem:[#allocation5 + $0x138] sm:$0xf0] }
  0xd4   :  { %1941 = vmatpush.bf16.msrb.mxu2 %v3400_v5  ;;  %v2809_v5 = vld [vmem:[#allocation5 + $0x198] sm:$0xf0]  ;;  %v3954_v59 = vld [vmem:[#allocation5 + $0x22c] sm:$0xf] }
  0xd5   :  { %1954 = vmatpush.bf16.msrb.mxu3 %v3528_v11  ;;  %v3065_v11 = vld [vmem:[#allocation5 + $0x398] sm:$0xf0]  ;;  %v2812_v14 = vor.u32 %v3934_v3, %v2809_v5  ;;  %v3886_v1 = vld [vmem:[#allocation5 + $0xc] sm:$0xf] }
  0xd6   :  { %v3068_v23 = vor.u32 %v3998_v9, %v3065_v11  ;;  %v2617_v3 = vld [vmem:[#allocation5 + $0x18] sm:$0xf0]  ;;  %v3918_v6 = vld [vmem:[#allocation5 + $0x10c] sm:$0xf] }
  0xd7   :  { %1916 = vmatpush.bf16.msrb.mxu0 %v3128_v22  ;;  %1929 = vmatpush.bf16.msrb.mxu1 %v3256_v26  ;;  %v1710_v13 = vpop.f32.mrf.mxu0  ;;  %v1723_v22 = vpop.f32.mrf.mxu1  ;;  %v2921_v26 = vld [vmem:[#allocation5 + $0x278] sm:$0xf0]  ;;  %v3950_v9 = vld [vmem:[#allocation5 + $0x20c] sm:$0xf] }
  0xd8   :  { %1942 = vmatpush.bf16.msrb.mxu2 %v3384_v27  ;;  %v1711_v21 = vadd.f32 %v1710_v13, %v4423_v2  ;;  %v3994_v27 = vld [vmem:[#allocation5 + $0x36c] sm:$0xf]  ;;  %v2873_v13 = vld [vmem:[#allocation5 + $0x218] sm:$0xf0] }
  0xd9   :  { %1955 = vmatpush.bf16.msrb.mxu3 %v3512_v30  ;;  %v2668_v30 = vor.u32 %v3898_v16, %v2665_v19  ;;  %v3052_v2 = vor.u32 %v3994_v27, %v3049_v28  ;;  %v4042_v19 = vld [vmem:[#allocation5 + $0x4ec] sm:$0xf]  ;;  %v2876_v27 = vor.u32 %v3950_v9, %v2873_v13  ;;  %v3225_v36 = vld [vmem:[#allocation5 + $0x4d8] sm:$0xf0] }
  0xda   :  { %1917 = vmatmul.bf16.vlgmr.msrb.gmra.mxu0 %v4398_v38  ;;  %1930 = vmatmul.bf16.vlgmr.msrb.gmra.mxu1 %v4402_v41  ;;  %v1724_v29 = vadd.f32 %v1723_v22, %v1711_v21  ;;  %v4074_v21 = vld [vmem:[#allocation5 + $0x5ec] sm:$0xf]  ;;  %v2620_v22 = vor.u32 %v3886_v1, %v2617_v3  ;;  %v3353_v40 = vld [vmem:[#allocation5 + $0x5d8] sm:$0xf0] }
  0xdb   :  { %1961 = vmatpush.bf16.msra.mxu0 %v2732_v31  ;;  %1974 = vmatpush.bf16.msra.mxu1 %v2860_v32  ;;  %v2796_v31 = vor.u32 %v3930_v20, %v2793_v24  ;;  %v2924_v32 = vor.u32 %v3962_v25, %v2921_v26  ;;  %v3241_v20 = vld [vmem:[#allocation5 + $0x4f8] sm:$0xf0]  ;;  %v4106_v24 = vld [vmem:[#allocation5 + $0x6ec] sm:$0xf]  ;;  %v2748_v26 = vor.u32 %v3918_v6, %v2745_v7 }
  0xdc   :  { %1987 = vmatpush.bf16.msra.mxu2 %v2988_v33  ;;  %1956 = vmatmul.bf16.vlgmr.msrb.gmra.mxu3 %v4400_v39  ;;  %v3894_v33 = vld [vmem:[#allocation5 + $0x4c] sm:$0xf]  ;;  %v3497_v25 = vld [vmem:[#allocation5 + $0x6f8] sm:$0xf0] }
  0xdd   :  { %2000 = vmatpush.bf16.msra.mxu3 %v3116_v42  ;;  %1943 = vmatmul.bf16.vlgmr.msrb.gmra.mxu2 %v4396_v35  ;;  %v3958_v42 = vld [vmem:[#allocation5 + $0x24c] sm:$0xf]  ;;  %v3321_v3 = vld [vmem:[#allocation5 + $0x598] sm:$0xf0] }
  0xde   :  { %v2908_v52 = vor.u32 %v3958_v42, %v2905_v43  ;;  %v4138_v28 = vld [vmem:[#allocation5 + $0x7ec] sm:$0xf]  ;;  %v3481_v43 = vld [vmem:[#allocation5 + $0x6d8] sm:$0xf0] }
  0xdf   :  { %1962 = vmatpush.bf16.msra.mxu0 %v2716_v48  ;;  %1975 = vmatpush.bf16.msra.mxu1 %v2844_v49  ;;  %v1749_v45 = vpop.f32.mrf.mxu3  ;;  %v2652_v48 = vor.u32 %v3894_v33, %v2649_v34  ;;  %v1725_v56 = vpop.f32.mrf.mxu1  ;;  %v3500_v33 = vor.u32 %v4106_v24, %v3497_v25  ;;  %v4038_v34 = vld [vmem:[#allocation5 + $0x4cc] sm:$0xf] }
  0xe0   :  { %1988 = vmatpush.bf16.msra.mxu2 %v2972_v50  ;;  %v1736_v37 = vpop.f32.mrf.mxu2  ;;  %v1712_v50 = vpop.f32.mrf.mxu0  ;;  %v4102_v42 = vld [vmem:[#allocation5 + $0x6cc] sm:$0xf]  ;;  %v3228_v46 = vor.u32 %v4038_v34, %v3225_v36  ;;  %v3465_v56 = vld [vmem:[#allocation5 + $0x6b8] sm:$0xf0] }
  0xe1   :  { %2001 = vmatpush.bf16.msra.mxu3 %v3100_v54  ;;  %v1737_v44 = vadd.f32 %v1736_v37, %v1724_v29  ;;  %v2633_v54 = vld [vmem:[#allocation5 + $0x38] sm:$0xf0]  ;;  %v4070_v37 = vld [vmem:[#allocation5 + $0x5cc] sm:$0xf] }
  0xe2   :  { %v2636_v63 = vor.u32 %v3890_v53, %v2633_v54  ;;  %v3625_v29 = vld [vmem:[#allocation5 + $0x7f8] sm:$0xf0]  ;;  %v3356_v47 = vor.u32 %v4070_v37, %v3353_v40  ;;  %v4034_v50 = vld [vmem:[#allocation5 + $0x4ac] sm:$0xf] }
  0xe3   :  { %1963 = vmatpush.bf16.msra.mxu0 %v2700_v60  ;;  %1976 = vmatpush.bf16.msra.mxu1 %v2828_v61  ;;  %v4430_v49 = vadd.f32 %v1749_v45, %v1737_v44  ;;  %v2889_v60 = vld [vmem:[#allocation5 + $0x238] sm:$0xf0]  ;;  %v3986_v61 = vld [vmem:[#allocation5 + $0x32c] sm:$0xf] }
  0xe4   :  { %1989 = vmatpush.bf16.msra.mxu2 %v2956_v62  ;;  %v3017_v62 = vld [vmem:[#allocation5 + $0x338] sm:$0xf0]  ;;  %v2892_v5 = vor.u32 %v3954_v59, %v2889_v60  ;;  %v4134_v44 = vld [vmem:[#allocation5 + $0x7cc] sm:$0xf] }
  0xe5   :  { %2002 = vmatpush.bf16.msra.mxu3 %v3084_v4  ;;  %v2764_v4 = vor.u32 %v3922_v55, %v2761_v58  ;;  %v3609_v45 = vld [vmem:[#allocation5 + $0x7d8] sm:$0xf0]  ;;  %v4098_v55 = vld [vmem:[#allocation5 + $0x6ac] sm:$0xf] }
  0xe6   :  { %v3612_v53 = vor.u32 %v4134_v44, %v3609_v45  ;;  %v3337_v54 = vld [vmem:[#allocation5 + $0x5b8] sm:$0xf0]  ;;  %v4126_v6 = vld [vmem:[#allocation5 + $0x78c] sm:$0xf] }
  0xe7   :  { %1964 = vmatpush.bf16.msra.mxu0 %v2684_v12  ;;  %1977 = vmatpush.bf16.msra.mxu1 %v2812_v14  ;;  %v3020_v12 = vor.u32 %v3986_v61, %v3017_v62  ;;  %v3982_v14 = vld [vmem:[#allocation5 + $0x30c] sm:$0xf]  ;;  %v1751_v16 = vpop.f32.mrf.mxu3  ;;  %v3593_v58 = vld [vmem:[#allocation5 + $0x7b8] sm:$0xf0]  ;;  %v3468_v61 = vor.u32 %v4098_v55, %v3465_v56  ;;  %v362_v55 = vperm.slane %v4420_v8, 1 }
  0xe8   :  { %1990 = vmatpush.bf16.msra.mxu2 %v2940_v15  ;;  %v1738_v11 = vpop.f32.mrf.mxu2  ;;  %v3001_v15 = vld [vmem:[#allocation5 + $0x318] sm:$0xf0]  ;;  %v4030_v62 = vld [vmem:[#allocation5 + $0x48c] sm:$0xf] }
  0xe9   :  { %2003 = vmatpush.bf16.msra.mxu3 %v3068_v23  ;;  %v3369_v23 = vld [vmem:[#allocation5 + $0x5f8] sm:$0xf0]  ;;  %v4026_v11 = vld [vmem:[#allocation5 + $0x46c] sm:$0xf] }
  0xea   :  { %v4058_v13 = vld [vmem:[#allocation5 + $0x56c] sm:$0xf]  ;;  %v3305_v16 = vld [vmem:[#allocation5 + $0x578] sm:$0xf0] }
  0xeb   :  { %1965 = vmatpush.bf16.msra.mxu0 %v2668_v30  ;;  %1978 = vmatpush.bf16.msra.mxu1 %v2796_v31  ;;  %v3004_v30 = vor.u32 %v3982_v14, %v3001_v15  ;;  %v3244_v31 = vor.u32 %v4042_v19, %v3241_v20  ;;  %v4090_v19 = vld [vmem:[#allocation5 + $0x66c] sm:$0xf]  ;;  %v3433_v20 = vld [vmem:[#allocation5 + $0x678] sm:$0xf0]  ;;  %v3308_v24 = vor.u32 %v4058_v13, %v3305_v16 }
  0xec   :  { %1991 = vmatpush.bf16.msra.mxu2 %v2924_v32  ;;  %v3372_v32 = vor.u32 %v4074_v21, %v3369_v23  ;;  %v4122_v21 = vld [vmem:[#allocation5 + $0x76c] sm:$0xf]  ;;  %v3436_v25 = vor.u32 %v4090_v19, %v3433_v20  ;;  %v3545_v37 = vld [vmem:[#allocation5 + $0x758] sm:$0xf0] }
  0xed   :  { %2004 = vmatpush.bf16.msra.mxu3 %v3052_v2  ;;  %v3628_v2 = vor.u32 %v4138_v28, %v3625_v29  ;;  %v4054_v28 = vld [vmem:[#allocation5 + $0x54c] sm:$0xf]  ;;  %v3145_v45 = vld [vmem:[#allocation5 + $0x438] sm:$0xf0] }
  0xee   :  { %v4118_v36 = vld [vmem:[#allocation5 + $0x74c] sm:$0xf] }
  0xef   :  { %1966 = vmatpush.bf16.msra.mxu0 %v2652_v48  ;;  %1979 = vmatpush.bf16.msra.mxu1 %v2780_v51  ;;  %v3484_v48 = vor.u32 %v4102_v42, %v3481_v43  ;;  %v3209_v51 = vld [vmem:[#allocation5 + $0x4b8] sm:$0xf0]  ;;  %v4018_v44 = vld [vmem:[#allocation5 + $0x42c] sm:$0xf] }
  0xf0   :  { %1992 = vmatpush.bf16.msra.mxu2 %v2908_v52  ;;  %v4066_v52 = vld [vmem:[#allocation5 + $0x5ac] sm:$0xf]  ;;  %v3212_v59 = vor.u32 %v4034_v50, %v3209_v51  ;;  %v3273_v50 = vld [vmem:[#allocation5 + $0x538] sm:$0xf0]  ;;  %v3148_v56 = vor.u32 %v4018_v44, %v3145_v45  ;;  %v3655_v44 = vld [vmem:[#allocation8 + $0x30] sm:$0xf] }
  0xf1   :  { %2005 = vmatpush.bf16.msra.mxu3 %v3036_v57  ;;  %v4130_v57 = vld [vmem:[#allocation5 + $0x7ac] sm:$0xf]  ;;  %v3340_v60 = vor.u32 %v4066_v52, %v3337_v54  ;;  %v3401_v52 = vld [vmem:[#allocation5 + $0x638] sm:$0xf0] }
  0xf2   :  { %v3596_v1 = vor.u32 %v4130_v57, %v3593_v58  ;;  %v4082_v51 = vld [vmem:[#allocation5 + $0x62c] sm:$0xf]  ;;  %v3529_v54 = vld [vmem:[#allocation5 + $0x738] sm:$0xf0] }
  0xf3   :  { %1967 = vmatpush.bf16.msra.mxu0 %v2636_v63  ;;  %1980 = vmatpush.bf16.msra.mxu1 %v2764_v4  ;;  %v3193_v63 = vld [vmem:[#allocation5 + $0x498] sm:$0xf0]  ;;  %v4094_v4 = vld [vmem:[#allocation5 + $0x68c] sm:$0xf] }
  0xf4   :  { %1993 = vmatpush.bf16.msra.mxu2 %v2892_v5  ;;  %v3449_v5 = vld [vmem:[#allocation5 + $0x698] sm:$0xf0]  ;;  %v4014_v57 = vld [vmem:[#allocation5 + $0x40c] sm:$0xf] }
  0xf5   :  { %2006 = vmatpush.bf16.msra.mxu3 %v3020_v12  ;;  %v3452_v9 = vor.u32 %v4094_v4, %v3449_v5  ;;  %v3177_v12 = vld [vmem:[#allocation5 + $0x478] sm:$0xf0]  ;;  %v4110_v4 = vld [vmem:[#allocation5 + $0x70c] sm:$0xf] }
  0xf6   :  { %v3180_v23 = vor.u32 %v4026_v11, %v3177_v12  ;;  %v4172_v11 = vld [vmem:[#allocation8 + $0xf4] sm:$0xf0] }
  0xf7   :  { %1968 = vmatpush.bf16.msra.mxu0 %v2620_v22  ;;  %1981 = vmatpush.bf16.msra.mxu1 %v2748_v26  ;;  %v4436_v7 = vpop.f32.mrf.mxu0  ;;  %v4438_v14 = vpop.f32.mrf.mxu1  ;;  %v3561_v22 = vld [vmem:[#allocation5 + $0x778] sm:$0xf0]  ;;  %v4022_v26 = vld [vmem:[#allocation5 + $0x44c] sm:$0xf] }
  0xf8   :  { %1994 = vmatpush.bf16.msra.mxu2 %v2876_v27  ;;  %v3161_v27 = vld [vmem:[#allocation5 + $0x458] sm:$0xf0]  ;;  %v1763_v8 = vadd.f32 %v4436_v7, %v362_v55  ;;  %v3743_v7 = vld [vmem:[#allocation8 + $0xe0] sm:$0xf] }
  0xf9   :  { %2007 = vmatpush.bf16.msra.mxu3 %v3004_v30  ;;  %v3564_v30 = vor.u32 %v4122_v21, %v3561_v22  ;;  %v3679_v21 = vld [vmem:[#allocation8 + $0x60] sm:$0xf]  ;;  %v4154_v22 = vld [vmem:[#allocation8 + $0x64] sm:$0xf0] }
  0xfa   :  { %1969 = vmatmul.bf16.vlgmr.msra.gmra.mxu0 %v4387_v10  ;;  %1982 = vmatmul.bf16.vlgmr.msra.gmra.mxu1 %v4391_v18  ;;  %v3577_v10 = vld [vmem:[#allocation5 + $0x798] sm:$0xf0]  ;;  %v1776_v20 = vadd.f32 %v4438_v14, %v1763_v8  ;;  %v3735_v14 = vld [vmem:[#allocation8 + $0xd0] sm:$0xf]  ;;  %v3647_v55 = vld [vmem:[#allocation8 + $0x20] sm:$0xf] }
  0xfb   :  { %2013 = vmatpush.bf16.msrb.mxu0 %v3244_v31  ;;  %2026 = vmatpush.bf16.msrb.mxu1 %v3372_v32  ;;  %v3580_v15 = vor.u32 %v4126_v6, %v3577_v10  ;;  %v3289_v31 = vld [vmem:[#allocation5 + $0x558] sm:$0xf0]  ;;  %v4086_v32 = vld [vmem:[#allocation5 + $0x64c] sm:$0xf]  ;;  %v3687_v10 = vld [vmem:[#allocation8 + $0x70] sm:$0xf] }
  0xfc   :  { %2039 = vmatpush.bf16.msrb.mxu2 %v3500_v33  ;;  %2008 = vmatmul.bf16.vlgmr.msra.gmra.mxu3 %v4389_v17  ;;  %v3196_v17 = vor.u32 %v4030_v62, %v3193_v63  ;;  %v3417_v33 = vld [vmem:[#allocation5 + $0x658] sm:$0xf0]  ;;  %v3292_v42 = vor.u32 %v4054_v28, %v3289_v31 }
  0xfd   :  { %2052 = vmatpush.bf16.msrb.mxu3 %v3628_v2  ;;  %1995 = vmatmul.bf16.vlgmr.msra.gmra.mxu2 %v4384_v0  ;;  %v4062_v0 = vld [vmem:[#allocation5 + $0x58c] sm:$0xf]  ;;  %v3164_v2 = vor.u32 %v4022_v26, %v3161_v27  ;;  %v3420_v43 = vor.u32 %v4086_v32, %v3417_v33  ;;  %v3257_v62 = vld [vmem:[#allocation5 + $0x518] sm:$0xf0]  ;;  %v3671_v27 = vld [vmem:[#allocation8 + $0x50] sm:$0xf] }
  0xfe   :  { %v3324_v18 = vor.u32 %v4062_v0, %v3321_v3  ;;  %v3385_v3 = vld [vmem:[#allocation5 + $0x618] sm:$0xf0] }
  0xff   :  { %2014 = vmatpush.bf16.msrb.mxu0 %v3228_v46  ;;  %2027 = vmatpush.bf16.msrb.mxu1 %v3356_v47  ;;  %v4442_v34 = vpop.f32.mrf.mxu3  ;;  %v1764_v40 = vpop.f32.mrf.mxu0  ;;  %v4050_v46 = vld [vmem:[#allocation5 + $0x52c] sm:$0xf]  ;;  %v3513_v6 = vld [vmem:[#allocation5 + $0x718] sm:$0xf0] }
 0x100   :  { %2040 = vmatpush.bf16.msrb.mxu2 %v3484_v48  ;;  %v4440_v29 = vpop.f32.mrf.mxu2  ;;  %v1777_v47 = vpop.f32.mrf.mxu1  ;;  %v3548_v48 = vor.u32 %v4118_v36, %v3545_v37  ;;  %v3276_v58 = vor.u32 %v4050_v46, %v3273_v50  ;;  %v4152_v28 = vld [vmem:[#allocation8 + $0x54] sm:$0xf0]  ;;  %v4150_v36 = vld [vmem:[#allocation8 + $0x44] sm:$0xf0] }
 0x101   :  { %2053 = vmatpush.bf16.msrb.mxu3 %v3612_v53  ;;  %v4114_v53 = vld [vmem:[#allocation5 + $0x72c] sm:$0xf]  ;;  %v3672_v31 = vor.u32 %v4152_v28, %v3671_v27  ;;  %v3719_v47 = vld [vmem:[#allocation8 + $0xb0] sm:$0xf]  ;;  %v4171_v27 = vld [vmem:[#allocation8 + $0xf4] sm:$0xf] }
 0x102   :  { %v3532_v0 = vor.u32 %v4114_v53, %v3529_v54  ;;  %v4166_v37 = vld [vmem:[#allocation8 + $0xc4] sm:$0xf0]  ;;  %v3753_v28 = vld [vmem:[#allocation8 + $0xf8] sm:$0xf0] }
 0x103   :  { %2015 = vmatpush.bf16.msrb.mxu0 %v3212_v59  ;;  %2028 = vmatpush.bf16.msrb.mxu1 %v3340_v60  ;;  %v3404_v59 = vor.u32 %v4082_v51, %v3401_v52  ;;  %v3129_v60 = vld [vmem:[#allocation5 + $0x418] sm:$0xf0]  ;;  %v3807_v51 = vld [vmem:[#allocation8 + $0x160] sm:$0xf]  ;;  %v4186_v52 = vld [vmem:[#allocation8 + $0x164] sm:$0xf0] }
 0x104   :  { %2041 = vmatpush.bf16.msrb.mxu2 %v3468_v61  ;;  %v4046_v61 = vld [vmem:[#allocation5 + $0x50c] sm:$0xf] }
 0x105   :  { %2054 = vmatpush.bf16.msrb.mxu3 %v3596_v1  ;;  %v4078_v1 = vld [vmem:[#allocation5 + $0x60c] sm:$0xf]  ;;  %v3260_v12 = vor.u32 %v4046_v61, %v3257_v62 }
 0x106   :  { %v3388_v13 = vor.u32 %v4078_v1, %v3385_v3  ;;  %v3799_v1 = vld [vmem:[#allocation8 + $0x150] sm:$0xf]  ;;  %v4184_v3 = vld [vmem:[#allocation8 + $0x154] sm:$0xf0] }
 0x107   :  { %2016 = vmatpush.bf16.msrb.mxu0 %v3196_v17  ;;  %2029 = vmatpush.bf16.msrb.mxu1 %v3324_v18  ;;  %v1803_v5 = vpop.f32.mrf.mxu3  ;;  %v4156_v17 = vld [vmem:[#allocation8 + $0x74] sm:$0xf0]  ;;  %v3132_v18 = vor.u32 %v4014_v57, %v3129_v60  ;;  %v3808_v57 = vor.u32 %v4186_v52, %v3807_v51  ;;  %v4162_v60 = vld [vmem:[#allocation8 + $0xa4] sm:$0xf0]  ;;  %v4167_v51 = vld [vmem:[#allocation8 + $0xd4] sm:$0xf] }
 0x108   :  { %2042 = vmatpush.bf16.msrb.mxu2 %v3452_v9  ;;  %v1790_v63 = vpop.f32.mrf.mxu2  ;;  %v3751_v9 = vld [vmem:[#allocation8 + $0xf0] sm:$0xf]  ;;  %v3688_v16 = vor.u32 %v4156_v17, %v3687_v10  ;;  %v3800_v10 = vor.u32 %v4184_v3, %v3799_v1  ;;  %v3737_v52 = vld [vmem:[#allocation8 + $0xd8] sm:$0xf0] }
 0x109   :  { %2055 = vmatpush.bf16.msrb.mxu3 %v3580_v15  ;;  %v3516_v15 = vor.u32 %v4110_v4, %v3513_v6  ;;  %v3752_v19 = vor.u32 %v4172_v11, %v3751_v9  ;;  %v3639_v5 = vld [vmem:[#allocation8 + $0x10] sm:$0xf]  ;;  %v4144_v6 = vld [vmem:[#allocation8 + $0x14] sm:$0xf0]  ;;  %v2065_v9 = vmul.f32 0.2, %v4430_v49 }
 0x10a   :  { %v3703_v17 = vld [vmem:[#allocation8 + $0x90] sm:$0xf]  ;;  %v3817_v1 = vld [vmem:[#allocation8 + $0x178] sm:$0xf0] }
 0x10b   :  { %2017 = vmatpush.bf16.msrb.mxu0 %v3180_v23  ;;  %2030 = vmatpush.bf16.msrb.mxu1 %v3308_v24  ;;  %v4170_v23 = vld [vmem:[#allocation8 + $0xe4] sm:$0xf0]  ;;  %v3680_v24 = vor.u32 %v4154_v22, %v3679_v21  ;;  %v3695_v21 = vld [vmem:[#allocation8 + $0x80] sm:$0xf] }
 0x10c   :  { %2043 = vmatpush.bf16.msrb.mxu2 %v3436_v25  ;;  %v1789_v25 = vadd.f32 %v4440_v29, %v1776_v20  ;;  %v3744_v26 = vor.u32 %v4170_v23, %v3743_v7  ;;  %v3727_v29 = vld [vmem:[#allocation8 + $0xc0] sm:$0xf]  ;;  %v4142_v20 = vld [vmem:[#allocation8 + $0x4] sm:$0xf0] }
 0x10d   :  { %2056 = vmatpush.bf16.msrb.mxu3 %v3564_v30  ;;  %v4168_v30 = vld [vmem:[#allocation8 + $0xd4] sm:$0xf0]  ;;  %v4158_v23 = vld [vmem:[#allocation8 + $0x84] sm:$0xf0] }
 0x10e   :  { %v1802_v32 = vadd.f32 %v4442_v34, %v1789_v25  ;;  %v3736_v33 = vor.u32 %v4168_v30, %v3735_v14  ;;  %v3689_v25 = vld [vmem:[#allocation8 + $0x78] sm:$0xf0] }
 0x10f   :  { %2018 = vmatpush.bf16.msrb.mxu0 %v3164_v2  ;;  %2031 = vmatpush.bf16.msrb.mxu1 %v3292_v42  ;;  %v4188_v42 = vld [vmem:[#allocation8 + $0x174] sm:$0xf0] }
 0x110   :  { %2044 = vmatpush.bf16.msrb.mxu2 %v3420_v43 }
 0x111   :  { %2057 = vmatpush.bf16.msrb.mxu3 %v3548_v48  ;;  %v4164_v48 = vld [vmem:[#allocation8 + $0xb4] sm:$0xf0] }
 0x112   :  { %v3720_v53 = vor.u32 %v4164_v48, %v3719_v47  ;;  %v4176_v47 = vld [vmem:[#allocation8 + $0x114] sm:$0xf0] }
 0x113   :  { %2019 = vmatpush.bf16.msrb.mxu0 %v3148_v56  ;;  %2032 = vmatpush.bf16.msrb.mxu1 %v3276_v58  ;;  %v4146_v56 = vld [vmem:[#allocation8 + $0x24] sm:$0xf0] }
 0x114   :  { %2045 = vmatpush.bf16.msrb.mxu2 %v3404_v59  ;;  %v3711_v59 = vld [vmem:[#allocation8 + $0xa0] sm:$0xf]  ;;  %v3648_v62 = vor.u32 %v4146_v56, %v3647_v55  ;;  %v4174_v55 = vld [vmem:[#allocation8 + $0x104] sm:$0xf0] }
 0x115   :  { %2058 = vmatpush.bf16.msrb.mxu3 %v3532_v0  ;;  %v3712_v4 = vor.u32 %v4162_v60, %v3711_v59  ;;  %v3665_v59 = vld [vmem:[#allocation8 + $0x48] sm:$0xf0]  ;;  %v4165_v60 = vld [vmem:[#allocation8 + $0xc4] sm:$0xf] }
 0x117   :  { %2020 = vmatpush.bf16.msrb.mxu0 %v3132_v18  ;;  %2033 = vmatpush.bf16.msrb.mxu1 %v3260_v12  ;;  %v1814_v40 = vpop.f32.mrf.mxu0  ;;  %v1827_v45 = vpop.f32.mrf.mxu1  ;;  %v4160_v18 = vld [vmem:[#allocation8 + $0x94] sm:$0xf0]  ;;  %v3640_v12 = vor.u32 %v4144_v6, %v3639_v5  ;;  %v3657_v5 = vld [vmem:[#allocation8 + $0x38] sm:$0xf0] }
 0x118   :  { %2046 = vmatpush.bf16.msrb.mxu2 %v3388_v13  ;;  %v1815_v43 = vadd.f32 %v1814_v40, %v1802_v32  ;;  %v3791_v13 = vld [vmem:[#allocation8 + $0x140] sm:$0xf]  ;;  %v4180_v32 = vld [vmem:[#allocation8 + $0x134] sm:$0xf0]  ;;  %v3681_v40 = vld [vmem:[#allocation8 + $0x68] sm:$0xf0] }
 0x119   :  { %2059 = vmatpush.bf16.msrb.mxu3 %v3516_v15  ;;  %v4182_v15 = vld [vmem:[#allocation8 + $0x144] sm:$0xf0] }
 0x11a   :  { %2021 = vmatmul.bf16.vlgmr.msrb.gmra.mxu0 %v4398_v38  ;;  %2034 = vmatmul.bf16.vlgmr.msrb.gmra.mxu1 %v4402_v41  ;;  %v3663_v38 = vld [vmem:[#allocation8 + $0x40] sm:$0xf]  ;;  %v3815_v41 = vld [vmem:[#allocation8 + $0x170] sm:$0xf]  ;;  %v1828_v34 = vadd.f32 %v1827_v45, %v1815_v43  ;;  %v3792_v7 = vor.u32 %v4182_v15, %v3791_v13  ;;  %v4145_v15 = vld [vmem:[#allocation8 + $0x24] sm:$0xf] }
 0x11b   :  { %2467 = vmatpush.bf16.msra.mxu0 %v3688_v16  ;;  %2480 = vmatpush.bf16.msra.mxu1 %v3752_v19  ;;  %v3664_v2 = vor.u32 %v4150_v36, %v3663_v38  ;;  %v3816_v46 = vor.u32 %v4188_v42, %v3815_v41  ;;  %v3704_v16 = vor.u32 %v4160_v18, %v3703_v17  ;;  %v3631_v19 = vld [vmem:[#allocation8] sm:$0xf]  ;;  %v4169_v41 = vld [vmem:[#allocation8 + $0xe4] sm:$0xf]  ;;  %v3745_v42 = vld [vmem:[#allocation8 + $0xe8] sm:$0xf0] }
 0x11c   :  { %2047 = vmatmul.bf16.vlgmr.msrb.gmra.mxu2 %v4396_v35  ;;  %2060 = vmatmul.bf16.vlgmr.msrb.gmra.mxu3 %v4400_v39  ;;  %v3728_v35 = vor.u32 %v4166_v37, %v3727_v29  ;;  %v4148_v39 = vld [vmem:[#allocation8 + $0x34] sm:$0xf0]  ;;  %v3632_v30 = vor.u32 %v4142_v20, %v3631_v19  ;;  %v3696_v38 = vor.u32 %v4158_v23, %v3695_v21  ;;  %v3775_v43 = vld [vmem:[#allocation8 + $0x120] sm:$0xf]  ;;  %v3721_v17 = vld [vmem:[#allocation8 + $0xb8] sm:$0xf0] }
 0x11d   :  { %2493 = vmatpush.bf16.msra.mxu2 %v3816_v46  ;;  %v3656_v50 = vor.u32 %v4148_v39, %v3655_v44  ;;  %v3756_v37 = vor.u32 %v4171_v27, %v3753_v28  ;;  %v4178_v44 = vld [vmem:[#allocation8 + $0x124] sm:$0xf0]  ;;  %v3767_v46 = vld [vmem:[#allocation8 + $0x110] sm:$0xf]  ;;  %v3748_v48 = vor.u32 %v4169_v41, %v3745_v42  ;;  %v4161_v20 = vld [vmem:[#allocation8 + $0xa4] sm:$0xf] }
 0x11e   :  { %v3776_v45 = vor.u32 %v4178_v44, %v3775_v43  ;;  %v3713_v21 = vld [vmem:[#allocation8 + $0xa8] sm:$0xf0]  ;;  %v4143_v27 = vld [vmem:[#allocation8 + $0x14] sm:$0xf]  ;;  %v3641_v28 = vld [vmem:[#allocation8 + $0x18] sm:$0xf0] }
 0x11f   :  { %2468 = vmatpush.bf16.msra.mxu0 %v3680_v24  ;;  %2481 = vmatpush.bf16.msra.mxu1 %v3744_v26  ;;  %v1853_v61 = vpop.f32.mrf.mxu3  ;;  %v1816_v0 = vpop.f32.mrf.mxu0  ;;  %v4155_v24 = vld [vmem:[#allocation8 + $0x74] sm:$0xf]  ;;  %v4141_v41 = vld [vmem:[#allocation8 + $0x4] sm:$0xf]  ;;  %v3633_v42 = vld [vmem:[#allocation8 + $0x8] sm:$0xf0] }
 0x120   :  { %v1840_v54 = vpop.f32.mrf.mxu2  ;;  %v1829_v8 = vpop.f32.mrf.mxu1  ;;  %v3692_v36 = vor.u32 %v4155_v24, %v3689_v25  ;;  %v4187_v0 = vld [vmem:[#allocation8 + $0x174] sm:$0xf]  ;;  %v3801_v25 = vld [vmem:[#allocation8 + $0x158] sm:$0xf0]  ;;  %v4157_v44 = vld [vmem:[#allocation8 + $0x84] sm:$0xf] }
 0x121   :  { %v1841_v58 = vadd.f32 %v1840_v54, %v1828_v34  ;;  %2494 = vmatpush.bf16.msra.mxu2 %v3808_v57  ;;  %v4151_v34 = vld [vmem:[#allocation8 + $0x54] sm:$0xf]  ;;  %v3759_v54 = vld [vmem:[#allocation8 + $0x100] sm:$0xf]  ;;  %v3740_v57 = vor.u32 %v4167_v51, %v3737_v52  ;;  %v3820_v8 = vor.u32 %v4187_v0, %v3817_v1  ;;  %v4177_v52 = vld [vmem:[#allocation8 + $0x124] sm:$0xf] }
 0x122   :  { %v4183_v24 = vld [vmem:[#allocation8 + $0x154] sm:$0xf]  ;;  %v4173_v0 = vld [vmem:[#allocation8 + $0x104] sm:$0xf]  ;;  %v3761_v1 = vld [vmem:[#allocation8 + $0x108] sm:$0xf0] }
 0x123   :  { %2469 = vmatpush.bf16.msra.mxu0 %v3672_v31  ;;  %2482 = vmatpush.bf16.msra.mxu1 %v3736_v33  ;;  %v1854_v63 = vadd.f32 %v1853_v61, %v1841_v58  ;;  %v3783_v31 = vld [vmem:[#allocation8 + $0x130] sm:$0xf]  ;;  %v2069_v33 = vmax.f32 %v4430_v49, %v2065_v9  ;;  %v4149_v58 = vld [vmem:[#allocation8 + $0x44] sm:$0xf]  ;;  %v3729_v61 = vld [vmem:[#allocation8 + $0xc8] sm:$0xf0] }
 0x124   :  { %v3784_v29 = vor.u32 %v4180_v32, %v3783_v31  ;;  %v3732_v3 = vor.u32 %v4165_v60, %v3729_v61  ;;  %v4159_v31 = vld [vmem:[#allocation8 + $0x94] sm:$0xf]  ;;  %v3705_v32 = vld [vmem:[#allocation8 + $0x98] sm:$0xf0] }
 0x125   :  { %2495 = vmatpush.bf16.msra.mxu2 %v3800_v10  ;;  %v2066_v11 = vmul.f32 0.2, %v1854_v63  ;;  %v4457_v39 = vpack.c.bf16 %v2069_v33, %v2069_v33  ;;  %v4163_v10 = vld [vmem:[#allocation8 + $0xb4] sm:$0xf]  ;;  %v3769_v61 = vld [vmem:[#allocation8 + $0x118] sm:$0xf0] }
 0x126   :  { %v3724_v13 = vor.u32 %v4163_v10, %v3721_v17  ;;  %v4175_v60 = vld [vmem:[#allocation8 + $0x114] sm:$0xf] }
 0x127   :  { %2470 = vmatpush.bf16.msra.mxu0 %v3664_v2  ;;  %2483 = vmatpush.bf16.msra.mxu1 %v3728_v35  ;;  %v1855_v26 = vpop.f32.mrf.mxu3  ;;  %v2070_v14 = vmax.f32 %v1854_v63, %v2066_v11  ;;  %v4153_v2 = vld [vmem:[#allocation8 + $0x64] sm:$0xf]  ;;  %v3668_v63 = vor.u32 %v4149_v58, %v3665_v59 }
 0x128   :  { %v1842_v22 = vpop.f32.mrf.mxu2  ;;  %v3684_v49 = vor.u32 %v4153_v2, %v3681_v40  ;;  %v4185_v11 = vld [vmem:[#allocation8 + $0x164] sm:$0xf]  ;;  %v3716_v26 = vor.u32 %v4161_v20, %v3713_v21  ;;  %v3793_v2 = vld [vmem:[#allocation8 + $0x148] sm:$0xf0]  ;;  %v3708_v40 = vor.u32 %v4159_v31, %v3705_v32 }
 0x129   :  { %2496 = vmatpush.bf16.msra.mxu2 %v3792_v7  ;;  %v4455_v35 = vpack.c.bf16 %v2070_v14, %v2070_v14 }
 0x12b   :  { %2471 = vmatpush.bf16.msra.mxu0 %v3656_v50  ;;  %2484 = vmatpush.bf16.msra.mxu1 %v3720_v53  ;;  %v3673_v50 = vld [vmem:[#allocation8 + $0x58] sm:$0xf0]  ;;  %v3768_v53 = vor.u32 %v4176_v47, %v3767_v46  ;;  %v4179_v47 = vld [vmem:[#allocation8 + $0x134] sm:$0xf] }
 0x12c   :  { %v3676_v56 = vor.u32 %v4151_v34, %v3673_v50  ;;  %v3636_v50 = vor.u32 %v4141_v41, %v3633_v42  ;;  %v4203_v42 = vld [vmem:[#allocation8 + $0x1f4] sm:$0xf] }
 0x12d   :  { %2497 = vmatpush.bf16.msra.mxu2 %v3784_v29 }
 0x12f   :  { %2472 = vmatpush.bf16.msra.mxu0 %v3648_v62  ;;  %2485 = vmatpush.bf16.msra.mxu1 %v3712_v4  ;;  %v3760_v62 = vor.u32 %v4174_v55, %v3759_v54  ;;  %v4147_v4 = vld [vmem:[#allocation8 + $0x34] sm:$0xf]  ;;  %v3879_v55 = vld [vmem:[#allocation8 + $0x1f0] sm:$0xf] }
 0x130   :  { %v3660_v9 = vor.u32 %v4147_v4, %v3657_v5 }
 0x131   :  { %2498 = vmatpush.bf16.msra.mxu2 %v3776_v45 }
 0x133   :  { %2473 = vmatpush.bf16.msra.mxu0 %v3640_v12  ;;  %2486 = vmatpush.bf16.msra.mxu1 %v3704_v16  ;;  %v3809_v12 = vld [vmem:[#allocation8 + $0x168] sm:$0xf0] }
 0x134   :  { %v3649_v16 = vld [vmem:[#allocation8 + $0x28] sm:$0xf0]  ;;  %v3812_v19 = vor.u32 %v4185_v11, %v3809_v12  ;;  %v4200_v11 = vld [vmem:[#allocation8 + $0x1d4] sm:$0xf0] }
 0x135   :  { %2499 = vmatpush.bf16.msra.mxu2 %v3768_v53  ;;  %v3652_v23 = vor.u32 %v4145_v15, %v3649_v16  ;;  %v3777_v53 = vld [vmem:[#allocation8 + $0x128] sm:$0xf0]  ;;  %v3855_v16 = vld [vmem:[#allocation8 + $0x1c0] sm:$0xf] }
 0x137   :  { %2474 = vmatpush.bf16.msra.mxu0 %v3632_v30  ;;  %2487 = vmatpush.bf16.msra.mxu1 %v3696_v38  ;;  %v1866_v6 = vpop.f32.mrf.mxu0  ;;  %v1879_v18 = vpop.f32.mrf.mxu1  ;;  %v3804_v30 = vor.u32 %v4183_v24, %v3801_v25  ;;  %v3644_v38 = vor.u32 %v4143_v27, %v3641_v28  ;;  %v3839_v28 = vld [vmem:[#allocation8 + $0x1a0] sm:$0xf] }
 0x139   :  { %2500 = vmatpush.bf16.msra.mxu2 %v3760_v62  ;;  %v3772_v62 = vor.u32 %v4175_v60, %v3769_v61  ;;  %v4195_v61 = vld [vmem:[#allocation8 + $0x1b4] sm:$0xf] }
 0x13a   :  { %2475 = vmatmul.bf16.vlgmr.msra.gmra.mxu0 %v4457_v39  ;;  %2488 = vmatmul.bf16.vlgmr.msra.gmra.mxu1 %v4455_v35 }
 0x13b   :  { %2519 = vmatpush.bf16.msrb.mxu0 %v3692_v36  ;;  %2532 = vmatpush.bf16.msrb.mxu1 %v3756_v37  ;;  %v4461_v36 = vld [vmem:[#allocation7] sm:$0xf]  ;;  %v4181_v37 = vld [vmem:[#allocation8 + $0x144] sm:$0xf] }
 0x13c   :  { %v363_v29 = vperm.slane %v4461_v36, 2  ;;  %v3796_v43 = vor.u32 %v4181_v37, %v3793_v2  ;;  %v3823_v2 = vld [vmem:[#allocation8 + $0x180] sm:$0xf] }
 0x13d   :  { %2545 = vmatpush.bf16.msrb.mxu2 %v3820_v8  ;;  %v4202_v8 = vld [vmem:[#allocation8 + $0x1e4] sm:$0xf0] }
 0x13e   :  { %v1867_v34 = vadd.f32 %v1866_v6, %v363_v29  ;;  %v3871_v6 = vld [vmem:[#allocation8 + $0x1e0] sm:$0xf]  ;;  %v4192_v29 = vld [vmem:[#allocation8 + $0x194] sm:$0xf0] }
 0x13f   :  { %2520 = vmatpush.bf16.msrb.mxu0 %v3684_v49  ;;  %2533 = vmatpush.bf16.msrb.mxu1 %v3748_v48  ;;  %v1905_v7 = vpop.f32.mrf.mxu3  ;;  %v1868_v14 = vpop.f32.mrf.mxu0  ;;  %v3697_v49 = vld [vmem:[#allocation8 + $0x88] sm:$0xf0]  ;;  %v3785_v48 = vld [vmem:[#allocation8 + $0x138] sm:$0xf0] }
 0x140   :  { %v1892_v22 = vpop.f32.mrf.mxu2  ;;  %v1881_v33 = vpop.f32.mrf.mxu1  ;;  %v3788_v51 = vor.u32 %v4179_v47, %v3785_v48  ;;  %v3700_v54 = vor.u32 %v4157_v44, %v3697_v49  ;;  %v1880_v59 = vadd.f32 %v1879_v18, %v1867_v34  ;;  %v3872_v18 = vor.u32 %v4202_v8, %v3871_v6  ;;  %v4194_v14 = vld [vmem:[#allocation8 + $0x1a4] sm:$0xf0]  ;;  %v3873_v47 = vld [vmem:[#allocation8 + $0x1e8] sm:$0xf0]  ;;  %v4191_v6 = vld [vmem:[#allocation8 + $0x194] sm:$0xf] }
 0x141   :  { %2546 = vmatpush.bf16.msrb.mxu2 %v3812_v19  ;;  %v4198_v19 = vld [vmem:[#allocation8 + $0x1c4] sm:$0xf0]  ;;  %v3840_v33 = vor.u32 %v4194_v14, %v3839_v28  ;;  %v3833_v8 = vld [vmem:[#allocation8 + $0x198] sm:$0xf0] }
 0x142   :  { %v3856_v20 = vor.u32 %v4198_v19, %v3855_v16  ;;  %v2141_v28 = vld [vmem:[%s4480_s4] sm:$0x3] }
 0x143   :  { %2521 = vmatpush.bf16.msrb.mxu0 %v3676_v56  ;;  %2534 = vmatpush.bf16.msrb.mxu1 %v3740_v57  ;;  %v4204_v56 = vld [vmem:[#allocation8 + $0x1f4] sm:$0xf0]  ;;  %v3780_v57 = vor.u32 %v4177_v52, %v3777_v53  ;;  %v2143_v14 = vperm.slane %v2141_v28, 0 }
 0x144   :  { %v3880_v58 = vor.u32 %v4204_v56, %v3879_v55  ;;  %v4197_v56 = vld [vmem:[#allocation8 + $0x1c4] sm:$0xf] }
 0x145   :  { %2547 = vmatpush.bf16.msrb.mxu2 %v3804_v30 }
 0x146   :  { %2506 = vmatpush.bf16.msra.mxu3 %v3880_v58 }
 0x147   :  { %2522 = vmatpush.bf16.msrb.mxu0 %v3668_v63  ;;  %2535 = vmatpush.bf16.msrb.mxu1 %v3732_v3  ;;  %v1907_v46 = vpop.f32.mrf.mxu3  ;;  %v1893_v63 = vadd.f32 %v1892_v22, %v1880_v59  ;;  %v3764_v3 = vor.u32 %v4173_v0, %v3761_v1  ;;  %v364_v59 = vperm.slane %v4461_v36, 3  ;;  %v4193_v1 = vld [vmem:[#allocation8 + $0x1a4] sm:$0xf]  ;;  %v3825_v36 = vld [vmem:[#allocation8 + $0x188] sm:$0xf0] }
 0x148   :  { %v1894_v45 = vpop.f32.mrf.mxu2  ;;  %v4201_v46 = vld [vmem:[#allocation8 + $0x1e4] sm:$0xf] }
 0x149   :  { %2548 = vmatpush.bf16.msrb.mxu2 %v3796_v43  ;;  %v1906_v4 = vadd.f32 %v1905_v7, %v1893_v63  ;;  %v3847_v7 = vld [vmem:[#allocation8 + $0x1b0] sm:$0xf]  ;;  %v3881_v43 = vld [vmem:[#allocation8 + $0x1f8] sm:$0xf0]  ;;  %v3876_v48 = vor.u32 %v4201_v46, %v3873_v47 }
 0x14a   :  { %2507 = vmatpush.bf16.msra.mxu3 %v3872_v18  ;;  %v3884_v44 = vor.u32 %v4203_v42, %v3881_v43 }
 0x14b   :  { %2523 = vmatpush.bf16.msrb.mxu0 %v3660_v9  ;;  %2536 = vmatpush.bf16.msrb.mxu1 %v3724_v13  ;;  %v3863_v9 = vld [vmem:[#allocation8 + $0x1d0] sm:$0xf] }
 0x14c   :  { %v3864_v12 = vor.u32 %v4200_v11, %v3863_v9  ;;  %v4189_v9 = vld [vmem:[#allocation8 + $0x184] sm:$0xf] }
 0x14d   :  { %2549 = vmatpush.bf16.msrb.mxu2 %v3788_v51  ;;  %v3865_v51 = vld [vmem:[#allocation8 + $0x1d8] sm:$0xf0]  ;;  %v3828_v11 = vor.u32 %v4189_v9, %v3825_v36 }
 0x14e   :  { %2508 = vmatpush.bf16.msra.mxu3 %v3864_v12 }
 0x14f   :  { %2524 = vmatpush.bf16.msrb.mxu0 %v3652_v23  ;;  %2537 = vmatpush.bf16.msrb.mxu1 %v3716_v26  ;;  %v4196_v23 = vld [vmem:[#allocation8 + $0x1b4] sm:$0xf0] }
 0x150   :  { %v3848_v26 = vor.u32 %v4196_v23, %v3847_v7 }
 0x151   :  { %2550 = vmatpush.bf16.msrb.mxu2 %v3780_v57  ;;  %v3857_v57 = vld [vmem:[#allocation8 + $0x1c8] sm:$0xf0] }
 0x152   :  { %2509 = vmatpush.bf16.msra.mxu3 %v3856_v20  ;;  %v3860_v58 = vor.u32 %v4197_v56, %v3857_v57 }
 0x153   :  { %2525 = vmatpush.bf16.msrb.mxu0 %v3644_v38  ;;  %2538 = vmatpush.bf16.msrb.mxu1 %v3708_v40  ;;  %v3831_v38 = vld [vmem:[#allocation8 + $0x190] sm:$0xf]  ;;  %v4190_v40 = vld [vmem:[#allocation8 + $0x184] sm:$0xf0] }
 0x154   :  { %v3832_v37 = vor.u32 %v4192_v29, %v3831_v38  ;;  %v3824_v41 = vor.u32 %v4190_v40, %v3823_v2 }
 0x155   :  { %2551 = vmatpush.bf16.msrb.mxu2 %v3772_v62  ;;  %v3849_v62 = vld [vmem:[#allocation8 + $0x1b8] sm:$0xf0] }
 0x156   :  { %2510 = vmatpush.bf16.msra.mxu3 %v3848_v26  ;;  %v3852_v0 = vor.u32 %v4195_v61, %v3849_v62 }
 0x157   :  { %2526 = vmatpush.bf16.msrb.mxu0 %v3636_v50  ;;  %2539 = vmatpush.bf16.msrb.mxu1 %v3700_v54  ;;  %v1918_v5 = vpop.f32.mrf.mxu0  ;;  %v1931_v17 = vpop.f32.mrf.mxu1  ;;  %v4199_v50 = vld [vmem:[#allocation8 + $0x1d4] sm:$0xf] }
 0x158   :  { %v1919_v10 = vadd.f32 %v1918_v5, %v1906_v4  ;;  %v3868_v53 = vor.u32 %v4199_v50, %v3865_v51 }
 0x159   :  { %2552 = vmatpush.bf16.msrb.mxu2 %v3764_v3  ;;  %v3841_v3 = vld [vmem:[#allocation8 + $0x1a8] sm:$0xf0] }
 0x15a   :  { %2527 = vmatmul.bf16.vlgmr.msrb.gmra.mxu0 %v4457_v39  ;;  %2540 = vmatmul.bf16.vlgmr.msrb.gmra.mxu1 %v4455_v35  ;;  %v1932_v39 = vadd.f32 %v1931_v17, %v1919_v10  ;;  %v3844_v5 = vor.u32 %v4193_v1, %v3841_v3  ;;  %v3836_v17 = vor.u32 %v4191_v6, %v3833_v8  ;;  %v4213_v3 = vld [vmem:[#allocation2] ss:$0 sm:$0xff] }
 0x15b   :  { %2511 = vmatpush.bf16.msra.mxu3 %v3840_v33 }
 0x15f   :  { %v1957_v35 = vpop.f32.mrf.mxu3  ;;  %v1920_v22 = vpop.f32.mrf.mxu0  ;;  %2512 = vmatpush.bf16.msra.mxu3 %v3832_v37  ;;  %v2144_v37 = vperm.slane %v2141_v28, 1 }
 0x160   :  { %v1944_v13 = vpop.f32.mrf.mxu2  ;;  %v1933_v24 = vpop.f32.mrf.mxu1 }
 0x161   :  { %v1945_v15 = vadd.f32 %v1944_v13, %v1932_v39 }
 0x163   :  { %v1958_v21 = vadd.f32 %v1957_v35, %v1945_v15  ;;  %2513 = vmatpush.bf16.msra.mxu3 %v3824_v41 }
 0x165   :  { %v2067_v25 = vmul.f32 0.2, %v1958_v21 }
 0x167   :  { %v2071_v27 = vmax.f32 %v1958_v21, %v2067_v25  ;;  %v1959_v32 = vpop.f32.mrf.mxu3  ;;  %2558 = vmatpush.bf16.msrb.mxu3 %v3884_v44 }
 0x168   :  { %v1946_v30 = vpop.f32.mrf.mxu2 }
 0x169   :  { %v2075_v31 = vpack.c.bf16 %v2071_v27, %v2071_v27 }
 0x16b   :  { %2501 = vmatmul.bf16.vlgmr.msra.gmra.mxu2 %v2075_v31  ;;  %2559 = vmatpush.bf16.msrb.mxu3 %v3876_v48 }
 0x16f   :  { %2560 = vmatpush.bf16.msrb.mxu3 %v3868_v53 }
 0x173   :  { %2561 = vmatpush.bf16.msrb.mxu3 %v3860_v58 }
 0x177   :  { %v1970_v49 = vpop.f32.mrf.mxu0  ;;  %v1983_v45 = vpop.f32.mrf.mxu1  ;;  %2562 = vmatpush.bf16.msrb.mxu3 %v3852_v0 }
 0x178   :  { %v1971_v4 = vadd.f32 %v1970_v49, %v364_v59 }
 0x17a   :  { %v1984_v10 = vadd.f32 %v1983_v45, %v1971_v4 }
 0x17b   :  { %2553 = vmatmul.bf16.vlgmr.msrb.gmra.mxu2 %v2075_v31  ;;  %2563 = vmatpush.bf16.msrb.mxu3 %v3844_v5 }
 0x17f   :  { %v2009_v52 = vpop.f32.mrf.mxu3  ;;  %v1972_v54 = vpop.f32.mrf.mxu0  ;;  %2564 = vmatpush.bf16.msrb.mxu3 %v3836_v17 }
 0x180   :  { %v1996_v34 = vpop.f32.mrf.mxu2  ;;  %v1985_v55 = vpop.f32.mrf.mxu1 }
 0x181   :  { %v1997_v18 = vadd.f32 %v1996_v34, %v1984_v10  ;;  %v2575_v55 = vld [vmem:[%s4481_s5] sm:$0x3] }
 0x182   :  { %v2577_v59 = vperm.slane %v2575_v55, 0 }
 0x183   :  { %v2010_v39 = vadd.f32 %v2009_v52, %v1997_v18  ;;  %2565 = vmatpush.bf16.msrb.mxu3 %v3828_v11 }
 0x187   :  { %v2011_v63 = vpop.f32.mrf.mxu3 }
 0x188   :  { %v1998_v60 = vpop.f32.mrf.mxu2 }
 0x189   :  { %v2578_v60 = vperm.slane %v2575_v55, 1 }
 0x197   :  { %v2022_v12 = vpop.f32.mrf.mxu0  ;;  %v2035_v13 = vpop.f32.mrf.mxu1 }
 0x198   :  { %v2023_v15 = vadd.f32 %v2022_v12, %v2010_v39 }
 0x19a   :  { %v2036_v35 = vadd.f32 %v2035_v13, %v2023_v15 }
 0x19f   :  { %v2048_v16 = vpop.f32.mrf.mxu2  ;;  %v2061_v20 = vpop.f32.mrf.mxu3 }
 0x1a0   :  { %v2049_v19 = vadd.f32 %v2048_v16, %v2036_v35  ;;  %v2024_v21 = vpop.f32.mrf.mxu0  ;;  %v2037_v22 = vpop.f32.mrf.mxu1 }
 0x1a2   :  { %v2062_v7 = vadd.f32 %v2061_v20, %v2049_v19 }
 0x1a4   :  { %v2068_v23 = vmul.f32 0.2, %v2062_v7 }
 0x1a6   :  { %v2072_v24 = vmax.f32 %v2062_v7, %v2068_v23 }
 0x1a7   :  { %v2050_v25 = vpop.f32.mrf.mxu2  ;;  %v2063_v27 = vpop.f32.mrf.mxu3 }
 0x1a8   :  { %v2076_v26 = vpack.c.bf16 %v2072_v24, %v2072_v24 }
 0x1aa   :  { %2514 = vmatmul.bf16.vlgmr.msra.gmra.mxu3 %v2076_v26 }
 0x1b7   :  { %v2476_v30 = vpop.f32.mrf.mxu0  ;;  %v2489_v32 = vpop.f32.mrf.mxu1 }
 0x1b8   :  { %v2477_v31 = vadd.f32 %v2476_v30, %v2143_v14 }
 0x1ba   :  { %v2490_v33 = vadd.f32 %v2489_v32, %v2477_v31  ;;  %2566 = vmatmul.bf16.vlgmr.msrb.gmra.mxu3 %v2076_v26 }
 0x1bf   :  { %v2478_v38 = vpop.f32.mrf.mxu0  ;;  %v2491_v29 = vpop.f32.mrf.mxu1 }
 0x1d7   :  { %v2528_v2 = vpop.f32.mrf.mxu0  ;;  %v2541_v41 = vpop.f32.mrf.mxu1 }
 0x1d8   :  { %v2529_v40 = vadd.f32 %v2528_v2, %v2144_v37 }
 0x1da   :  { %v2542_v42 = vadd.f32 %v2541_v41, %v2529_v40 }
 0x1df   :  { %v2530_v43 = vpop.f32.mrf.mxu0  ;;  %v2543_v44 = vpop.f32.mrf.mxu1 }
 0x1ee   :  { %v2502_v49 = vpop.f32.mrf.mxu2 }
 0x1ef   :  { %v2503_v45 = vadd.f32 %v2502_v49, %v2490_v33 }
 0x1f6   :  { %v2504_v46 = vpop.f32.mrf.mxu2 }
 0x1fe   :  { %v2554_v47 = vpop.f32.mrf.mxu2 }
 0x1ff   :  { %v2555_v52 = vadd.f32 %v2554_v47, %v2542_v42 }
 0x206   :  { %v2556_v48 = vpop.f32.mrf.mxu2 }
 0x22d   :  { %v2515_v34 = vpop.f32.mrf.mxu3 }
 0x22e   :  { %v2516_v51 = vadd.f32 %v2515_v34, %v2503_v45 }
 0x230   :  { %v2571_v53 = vmul.f32 0.2, %v2516_v51 }
 0x232   :  { %v2573_v57 = vmax.f32 %v2516_v51, %v2571_v53 }
 0x234   :  { %v2581_v62 = vmul.f32 %v2577_v59, %v2573_v57 }
 0x235   :  { %v2517_v50 = vpop.f32.mrf.mxu3 }
 0x23d   :  { %v2567_v54 = vpop.f32.mrf.mxu3 }
 0x23e   :  { %v2568_v56 = vadd.f32 %v2567_v54, %v2555_v52 }
 0x240   :  { %v2572_v58 = vmul.f32 0.2, %v2568_v56 }
 0x242   :  { %v2574_v61 = vmax.f32 %v2568_v56, %v2572_v58 }
 0x244   :  { %v2582_v63 = vmul.f32 %v2578_v60, %v2574_v61 }
 0x245   :  { %v2569_v0 = vpop.f32.mrf.mxu3 }
 0x246   :  { %v2583_v1 = vadd.f32 %v2582_v63, %v2581_v62 }
 0x248   :  { %2584 = vadd.xlane.f32.xlu0 %v2583_v1 }
 0x2bb   :  { %v2585_v4 = vpop.xlane.xlu0 %2584 }
 0x2bc   :  { %v2590_v5 = vadd.f32 %v4213_v3, %v2585_v4 }
 0x2be   :  { %v2591_v6 = vsub.f32 0.0, %v2590_v5 }
 0x2c0   :  { %v2592_v8 = vmul.f32 1.442695, %v2591_v6 }
 0x2c2   :  { %4214 = vpow2.f32 %v2592_v8 }
 0x2c8   :  { %v4215_v10 = vpop.eup %4214 }
 0x2c9   :  { %v2594_v17 = vadd.f32 1.0, %v4215_v10 }
 0x2cb   :  { %4216 = vrcp.f32 %v2594_v17 }
 0x2d1   :  { %v4217_v18 = vpop.eup %4216 }
 0x2d2   :  { %2597 = vst.msk [vmem:[%s4483_s7] sm:$0xff] %vm2596_vm0, %v4217_v18 }
 0x2d3   :  { %2602 = vsyncpa [#allocation4], 1 }
 0x2d4   :  { %2603 = vsyncpa [#allocation6], 1 }
 0x2d5   :  { %2604 = vsyncpa [#allocation9], 1 }

</bundles_post_ra>
